<compile_context>
chip_gen: v7x
topology: tpu7x:2x2x1
jax: 0.10.0
libtpu: 0.0.40
codegen_flags: <defaults>
</compile_context>

<pallas_src>
import functools

import jax
import jax.numpy as jnp
import numpy as np
from jax.experimental import pallas as pl
from jax.experimental.pallas import tpu as pltpu

LANE = 128
TILE_Q = 16  # batch-tile quantum: bf16 sublane pair keeps all blocks layout-native


def _round_up(x, m):
    return ((x + m - 1) // m) * m


# -----------------------------------------------------------------------------
# Pallas kernel: fused encoder-resblock + decoder-resblock MLP over a batch tile
# -----------------------------------------------------------------------------
def _dpa_fwd_kernel(
    x_ref,                     # (TN, Dp)        bf16
    wenc1_ref, benc1_ref,      # (Dp, Hp+Lp)     bf16, (1, Hp+Lp) f32  ([We1|Wes],[be1|bes])
    we2_ref,   benc2_ref,      # (Hp, Lp)        bf16, (1, Lp)    f32  (We2, be2)
    wdec1_ref, bdec1_ref,      # (Lp, Hp+Op)     bf16, (1, Hp+Op) f32  ([Wd1|Wds],[bd1|bds])
    wd2_ref,   bdec2_ref,      # (Hp, Op)        bf16, (1, Op)    f32  (Wd2, bd2)
    o_ref,                     # (TN, Op)        bf16
    *,
    hp,                        # static: padded hidden width (lane-aligned split point)
):
    x_bf = x_ref[...]

    # ---- encoder StoResBlock: one dot gives main pre-activation AND skip term ----
    h = jnp.dot(x_bf, wenc1_ref[...], preferred_element_type=jnp.float32) + benc1_ref[...]
    h_main = jnp.maximum(h[:, :hp], 0.0)                    # ReLU (f32 on VPU)
    z = (jnp.dot(h_main.astype(jnp.bfloat16), we2_ref[...],
                 preferred_element_type=jnp.float32)
         + h[:, hp:] + benc2_ref[...])                      # main + skip + be2

    # NOTE: forward() does z[:, k:].normal_() with k == latent_dim -> empty slice, no-op.

    # ---- decoder StoResBlock: same column-fused structure ----
    z_bf = z.astype(jnp.bfloat16)
    g = jnp.dot(z_bf, wdec1_ref[...], preferred_element_type=jnp.float32) + bdec1_ref[...]
    g_main = jnp.maximum(g[:, :hp], 0.0)                    # ReLU (f32 on VPU)
    y = (jnp.dot(g_main.astype(jnp.bfloat16), wd2_ref[...],
                 preferred_element_type=jnp.float32)
         + g[:, hp:] + bdec2_ref[...])                      # main + skip + bd2

    o_ref[...] = y.astype(o_ref.dtype)


def _full_spec(shape):
    """BlockSpec that loads the entire (small) parameter array every grid step."""
    return pl.BlockSpec(shape, lambda i, _shape=shape: tuple(0 for _ in _shape))


# -----------------------------------------------------------------------------
# Parameter packing: pad to (8,128)-aligned dims, fuse skip weights COLUMN-wise,
# cast weights to bf16 (biases stay f32).
# -----------------------------------------------------------------------------
def pack_params(params, data_dim, latent_dim, hidden_dim, out_dim):
    Dp = _round_up(data_dim, LANE)
    Hp = _round_up(hidden_dim, LANE)
    Lp = _round_up(latent_dim, LANE)
    Op = _round_up(out_dim, LANE)

    def pad_w(w, rows, cols):
        w = np.asarray(w, np.float32)
        out = np.zeros((rows, cols), np.float32)
        out[: w.shape[0], : w.shape[1]] = w
        return out

    def pad_b(b, cols):
        b = np.asarray(b, np.float32).reshape(1, -1)
        out = np.zeros((1, cols), np.float32)
        out[:, : b.shape[1]] = b
        return out

    packed = {
        # encoder: first dot computes [x@We1 | x@Wes] in one shot
        "wenc1": jnp.asarray(np.concatenate(
                     [pad_w(params["we1"], Dp, Hp), pad_w(params["wes"], Dp, Lp)], axis=1),
                     jnp.bfloat16),
        "benc1": jnp.asarray(np.concatenate(
                     [pad_b(params["be1"], Hp), pad_b(params["bes"], Lp)], axis=1),
                     jnp.float32),
        "we2":   jnp.asarray(pad_w(params["we2"], Hp, Lp), jnp.bfloat16),
        "benc2": jnp.asarray(pad_b(params["be2"], Lp), jnp.float32),
        # decoder: first dot computes [z@Wd1 | z@Wds] in one shot
        "wdec1": jnp.asarray(np.concatenate(
                     [pad_w(params["wd1"], Lp, Hp), pad_w(params["wds"], Lp, Op)], axis=1),
                     jnp.bfloat16),
        "bdec1": jnp.asarray(np.concatenate(
                     [pad_b(params["bd1"], Hp), pad_b(params["bds"], Op)], axis=1),
                     jnp.float32),
        "wd2":   jnp.asarray(pad_w(params["wd2"], Hp, Op), jnp.bfloat16),
        "bdec2": jnp.asarray(pad_b(params["bd2"], Op), jnp.float32),
    }
    dims = {"data_dim": data_dim, "out_dim": out_dim,
            "Dp": Dp, "Hp": Hp, "Lp": Lp, "Op": Op}
    return packed, dims


# -----------------------------------------------------------------------------
# Batch tiling: largest tile <= tile_n, quantized, with an EVEN grid when possible
# (v7x shards the parallel batch axis across its 2 TensorCores).
# -----------------------------------------------------------------------------
def _choose_tile(n, tile_n):
    n_q = _round_up(n, TILE_Q)
    tile = min(_round_up(tile_n, TILE_Q), n_q)
    grid = -(-n_q // tile)
    if grid % 2 == 1 and n_q >= 2 * TILE_Q:
        target = grid + 1
        tile2 = _round_up(-(-n_q // target), TILE_Q)
        grid2 = -(-n_q // tile2)
        if grid2 % 2 == 0:
            tile, grid = tile2, grid2
    return tile, grid


# -----------------------------------------------------------------------------
# Wrapper: pad batch (bf16), launch the fused kernel over lane-dense tiles, slice back.
# -----------------------------------------------------------------------------
def mddpa_forward(x, packed, dims, *, tile_n=2048):
    """Runs decoder(encoder(x)). x: (N, data_dim), any N; returns (N, out_dim) f32."""
    n, data_dim = x.shape
    assert data_dim == dims["data_dim"]
    Dp, Hp, Op, out_dim = dims["Dp"], dims["Hp"], dims["Op"], dims["out_dim"]

    tile, grid = _choose_tile(n, tile_n)
    n_pad = tile * grid

    # Single fused pad+cast (no standalone zeros()+set() round trip); bf16 halves
    # the dominant input DMA.
    x_p = jnp.pad(x.astype(jnp.bfloat16), ((0, n_pad - n), (0, Dp - data_dim)))

    param_order = ("wenc1", "benc1", "we2", "benc2", "wdec1", "bdec1", "wd2", "bdec2")
    in_specs = [pl.BlockSpec((tile, Dp), lambda i: (i, 0))]
    args = [x_p]
    for name in param_order:
        p = packed[name]
        in_specs.append(_full_spec(p.shape))
        args.append(p)

    out_padded = pl.pallas_call(
        functools.partial(_dpa_fwd_kernel, hp=Hp),
        out_shape=jax.ShapeDtypeStruct((n_pad, Op), jnp.bfloat16),
        grid_spec=pltpu.PrefetchScalarGridSpec(
            num_scalar_prefetch=0,
            grid=(grid,),
            in_specs=in_specs,
            out_specs=pl.BlockSpec((tile, Op), lambda i: (i, 0)),
        ),
        compiler_params=pltpu.CompilerParams(
            dimension_semantics=("parallel",),
            vmem_limit_bytes=48 * 1024 * 1024,  # safe on v7x's 64 MiB physical VMEM
        ),
    )(*args)

    return out_padded[:n, :out_dim].astype(jnp.float32)


# -----------------------------------------------------------------------------
# Deterministic parameter init (PyTorch nn.Linear-style uniform(-1/sqrt(fan_in)))
# -----------------------------------------------------------------------------
def init_params(key, data_dim, latent_dim, hidden_dim, out_dim):
    def linear(key, fan_in, fan_out):
        kw, kb = jax.random.split(key)
        bound = 1.0 / np.sqrt(fan_in)
        w = jax.random.uniform(kw, (fan_in, fan_out), jnp.float32, -bound, bound)
        b = jax.random.uniform(kb, (1, fan_out), jnp.float32, -bound, bound)
        return w, b

    keys = jax.random.split(key, 6)
    params = {}
    # encoder resblock: data_dim -> hidden -> latent, skip data_dim -> latent
    params["we1"], params["be1"] = linear(keys[0], data_dim, hidden_dim)
    params["we2"], params["be2"] = linear(keys[1], hidden_dim, latent_dim)
    params["wes"], params["bes"] = linear(keys[2], data_dim, latent_dim)
    # decoder resblock: latent -> hidden -> out, skip latent -> out
    params["wd1"], params["bd1"] = linear(keys[3], latent_dim, hidden_dim)
    params["wd2"], params["bd2"] = linear(keys[4], hidden_dim, out_dim)
    params["wds"], params["bds"] = linear(keys[5], latent_dim, out_dim)
    return params


def reference_forward(x, p):
    """Pure-JAX f32 reference of the same math (correctness sanity check)."""
    h1 = jnp.maximum(x @ p["we1"] + p["be1"], 0.0)
    z = h1 @ p["we2"] + p["be2"] + x @ p["wes"] + p["bes"]
    h2 = jnp.maximum(z @ p["wd1"] + p["bd1"], 0.0)
    return h2 @ p["wd2"] + p["bd2"] + z @ p["wds"] + p["bds"]


if __name__ == "__main__":
    # Module-default feature dims (data_dim=2, latent_dim=10, hidden_dim=500),
    # small batch for a quick synthetic run (tile heuristic gives a 2-step grid).
    N, DATA_DIM, LATENT_DIM, HIDDEN_DIM = 256, 2, 10, 500
    OUT_DIM = DATA_DIM

    key = jax.random.PRNGKey(0)
    k_x, k_p = jax.random.split(key)
    x = jax.random.normal(k_x, (N, DATA_DIM), dtype=jnp.float32)
    params = init_params(k_p, DATA_DIM, LATENT_DIM, HIDDEN_DIM, OUT_DIM)
    packed, dims = pack_params(params, DATA_DIM, LATENT_DIM, HIDDEN_DIM, OUT_DIM)

    out = mddpa_forward(x, packed, dims, tile_n=2048)
    out = jax.block_until_ready(out)

    ref = reference_forward(x, params)
    # bf16 input/weights/output -> ~2-3 decimal digits of agreement vs pure f32.
    np.testing.assert_allclose(np.asarray(out), np.asarray(ref), rtol=5e-2, atol=5e-2)

    print("KERNEL_OK")
</pallas_src>

<mosaic_0001>
module attributes {stable_mosaic.version = 11 : i64} {
  func.func @_dpa_fwd_kernel(%arg0: i32, %arg1: memref<128x128xbf16, #tpu.memory_space<vmem>>, %arg2: memref<128x640xbf16, #tpu.memory_space<vmem>>, %arg3: memref<1x640xf32, #tpu.memory_space<vmem>>, %arg4: memref<512x128xbf16, #tpu.memory_space<vmem>>, %arg5: memref<1x128xf32, #tpu.memory_space<vmem>>, %arg6: memref<128x640xbf16, #tpu.memory_space<vmem>>, %arg7: memref<1x640xf32, #tpu.memory_space<vmem>>, %arg8: memref<512x128xbf16, #tpu.memory_space<vmem>>, %arg9: memref<1x128xf32, #tpu.memory_space<vmem>>, %arg10: memref<128x128xbf16, #tpu.memory_space<vmem>>) attributes {dimension_semantics = [#tpu.dimension_semantics<parallel>], iteration_bounds = array<i64: 2>, scalar_prefetch = 0 : i64, scratch_operands = 0 : i64, tpu.core_type = #tpu.core_type<tc>, window_params = [{transform_indices = @transform_0, window_bounds = array<i64: 128, 128>}, {pipeline_mode = #tpu.pipeline_mode<synchronous>, transform_indices = @transform_1, window_bounds = array<i64: 128, 640>}, {pipeline_mode = #tpu.pipeline_mode<synchronous>, transform_indices = @transform_2, window_bounds = array<i64: 1, 640>}, {pipeline_mode = #tpu.pipeline_mode<synchronous>, transform_indices = @transform_3, window_bounds = array<i64: 512, 128>}, {pipeline_mode = #tpu.pipeline_mode<synchronous>, transform_indices = @transform_4, window_bounds = array<i64: 1, 128>}, {pipeline_mode = #tpu.pipeline_mode<synchronous>, transform_indices = @transform_5, window_bounds = array<i64: 128, 640>}, {pipeline_mode = #tpu.pipeline_mode<synchronous>, transform_indices = @transform_6, window_bounds = array<i64: 1, 640>}, {pipeline_mode = #tpu.pipeline_mode<synchronous>, transform_indices = @transform_7, window_bounds = array<i64: 512, 128>}, {pipeline_mode = #tpu.pipeline_mode<synchronous>, transform_indices = @transform_8, window_bounds = array<i64: 1, 128>}, {transform_indices = @transform_9, window_bounds = array<i64: 128, 128>}]} {
    %c0 = arith.constant 0 : index
    %c0_0 = arith.constant 0 : index
    %0 = vector.load %arg1[%c0, %c0_0] : memref<128x128xbf16, #tpu.memory_space<vmem>>, vector<128x128xbf16>
    %c0_1 = arith.constant 0 : index
    %c0_2 = arith.constant 0 : index
    %1 = vector.load %arg2[%c0_1, %c0_2] : memref<128x640xbf16, #tpu.memory_space<vmem>>, vector<128x640xbf16>
    %cst = arith.constant dense<0.000000e+00> : vector<128x640xf32>
    %2 = tpu.matmul %0, %1, %cst {dimension_numbers = #tpu.dot_dimension_numbers<[1], [0], [0], [1], [0, 0, 1, 1], [], []>} : vector<128x128xbf16>, vector<128x640xbf16>, vector<128x640xf32> -> vector<128x640xf32>
    %c0_3 = arith.constant 0 : index
    %c0_4 = arith.constant 0 : index
    %3 = vector.load %arg3[%c0_3, %c0_4] : memref<1x640xf32, #tpu.memory_space<vmem>>, vector<1x640xf32>
    %4 = vector.broadcast %3 : vector<1x640xf32> to vector<128x640xf32>
    %5 = arith.addf %2, %4 : vector<128x640xf32>
    %6 = vector.extract_strided_slice %5 {offsets = [0, 0], sizes = [128, 512], strides = [1, 1]} : vector<128x640xf32> to vector<128x512xf32>
    %cst_5 = arith.constant 0.000000e+00 : f32
    %7 = vector.broadcast %cst_5 : f32 to vector<128x512xf32>
    %8 = arith.maximumf %6, %7 : vector<128x512xf32>
    %9 = arith.truncf %8 : vector<128x512xf32> to vector<128x512xbf16>
    %c0_6 = arith.constant 0 : index
    %c0_7 = arith.constant 0 : index
    %10 = vector.load %arg4[%c0_6, %c0_7] : memref<512x128xbf16, #tpu.memory_space<vmem>>, vector<512x128xbf16>
    %cst_8 = arith.constant dense<0.000000e+00> : vector<128x128xf32>
    %11 = tpu.matmul %9, %10, %cst_8 {dimension_numbers = #tpu.dot_dimension_numbers<[1], [0], [0], [1], [0, 0, 1, 1], [], []>} : vector<128x512xbf16>, vector<512x128xbf16>, vector<128x128xf32> -> vector<128x128xf32>
    %12 = vector.extract_strided_slice %5 {offsets = [0, 512], sizes = [128, 128], strides = [1, 1]} : vector<128x640xf32> to vector<128x128xf32>
    %13 = arith.addf %11, %12 : vector<128x128xf32>
    %c0_9 = arith.constant 0 : index
    %c0_10 = arith.constant 0 : index
    %14 = vector.load %arg5[%c0_9, %c0_10] : memref<1x128xf32, #tpu.memory_space<vmem>>, vector<1x128xf32>
    %15 = vector.broadcast %14 : vector<1x128xf32> to vector<128x128xf32>
    %16 = arith.addf %13, %15 : vector<128x128xf32>
    %17 = arith.truncf %16 : vector<128x128xf32> to vector<128x128xbf16>
    %c0_11 = arith.constant 0 : index
    %c0_12 = arith.constant 0 : index
    %18 = vector.load %arg6[%c0_11, %c0_12] : memref<128x640xbf16, #tpu.memory_space<vmem>>, vector<128x640xbf16>
    %cst_13 = arith.constant dense<0.000000e+00> : vector<128x640xf32>
    %19 = tpu.matmul %17, %18, %cst_13 {dimension_numbers = #tpu.dot_dimension_numbers<[1], [0], [0], [1], [0, 0, 1, 1], [], []>} : vector<128x128xbf16>, vector<128x640xbf16>, vector<128x640xf32> -> vector<128x640xf32>
    %c0_14 = arith.constant 0 : index
    %c0_15 = arith.constant 0 : index
    %20 = vector.load %arg7[%c0_14, %c0_15] : memref<1x640xf32, #tpu.memory_space<vmem>>, vector<1x640xf32>
    %21 = vector.broadcast %20 : vector<1x640xf32> to vector<128x640xf32>
    %22 = arith.addf %19, %21 : vector<128x640xf32>
    %23 = vector.extract_strided_slice %22 {offsets = [0, 0], sizes = [128, 512], strides = [1, 1]} : vector<128x640xf32> to vector<128x512xf32>
    %cst_16 = arith.constant 0.000000e+00 : f32
    %24 = vector.broadcast %cst_16 : f32 to vector<128x512xf32>
    %25 = arith.maximumf %23, %24 : vector<128x512xf32>
    %26 = arith.truncf %25 : vector<128x512xf32> to vector<128x512xbf16>
    %c0_17 = arith.constant 0 : index
    %c0_18 = arith.constant 0 : index
    %27 = vector.load %arg8[%c0_17, %c0_18] : memref<512x128xbf16, #tpu.memory_space<vmem>>, vector<512x128xbf16>
    %cst_19 = arith.constant dense<0.000000e+00> : vector<128x128xf32>
    %28 = tpu.matmul %26, %27, %cst_19 {dimension_numbers = #tpu.dot_dimension_numbers<[1], [0], [0], [1], [0, 0, 1, 1], [], []>} : vector<128x512xbf16>, vector<512x128xbf16>, vector<128x128xf32> -> vector<128x128xf32>
    %29 = vector.extract_strided_slice %22 {offsets = [0, 512], sizes = [128, 128], strides = [1, 1]} : vector<128x640xf32> to vector<128x128xf32>
    %30 = arith.addf %28, %29 : vector<128x128xf32>
    %c0_20 = arith.constant 0 : index
    %c0_21 = arith.constant 0 : index
    %31 = vector.load %arg9[%c0_20, %c0_21] : memref<1x128xf32, #tpu.memory_space<vmem>>, vector<1x128xf32>
    %32 = vector.broadcast %31 : vector<1x128xf32> to vector<128x128xf32>
    %33 = arith.addf %30, %32 : vector<128x128xf32>
    %34 = arith.truncf %33 : vector<128x128xf32> to vector<128x128xbf16>
    %c0_22 = arith.constant 0 : index
    %c0_23 = arith.constant 0 : index
    %35 = vector.load %arg10[%c0_22, %c0_23] : memref<128x128xbf16, #tpu.memory_space<vmem>>, vector<128x128xbf16>
    tpu.vector_store %arg10[%c0_22, %c0_23], %34 {strides = array<i32>} : memref<128x128xbf16, #tpu.memory_space<vmem>>, vector<128x128xbf16>,
    return
  }
  func.func @transform_0(%arg0: i32) -> (i32, i32) {
    %c0_i32 = arith.constant 0 : i32
    %c0_i32_0 = arith.constant 0 : i32
    return %arg0, %c0_i32 : i32, i32
  }
  func.func @transform_1(%arg0: i32) -> (i32, i32) {
    %c0_i32 = arith.constant 0 : i32
    %c0_i32_0 = arith.constant 0 : i32
    %c0_i32_1 = arith.constant 0 : i32
    return %c0_i32, %c0_i32_0 : i32, i32
  }
  func.func @transform_2(%arg0: i32) -> (i32, i32) {
    %c0_i32 = arith.constant 0 : i32
    %c0_i32_0 = arith.constant 0 : i32
    %c0_i32_1 = arith.constant 0 : i32
    return %c0_i32, %c0_i32_0 : i32, i32
  }
  func.func @transform_3(%arg0: i32) -> (i32, i32) {
    %c0_i32 = arith.constant 0 : i32
    %c0_i32_0 = arith.constant 0 : i32
    %c0_i32_1 = arith.constant 0 : i32
    return %c0_i32, %c0_i32_0 : i32, i32
  }
  func.func @transform_4(%arg0: i32) -> (i32, i32) {
    %c0_i32 = arith.constant 0 : i32
    %c0_i32_0 = arith.constant 0 : i32
    %c0_i32_1 = arith.constant 0 : i32
    return %c0_i32, %c0_i32_0 : i32, i32
  }
  func.func @transform_5(%arg0: i32) -> (i32, i32) {
    %c0_i32 = arith.constant 0 : i32
    %c0_i32_0 = arith.constant 0 : i32
    %c0_i32_1 = arith.constant 0 : i32
    return %c0_i32, %c0_i32_0 : i32, i32
  }
  func.func @transform_6(%arg0: i32) -> (i32, i32) {
    %c0_i32 = arith.constant 0 : i32
    %c0_i32_0 = arith.constant 0 : i32
    %c0_i32_1 = arith.constant 0 : i32
    return %c0_i32, %c0_i32_0 : i32, i32
  }
  func.func @transform_7(%arg0: i32) -> (i32, i32) {
    %c0_i32 = arith.constant 0 : i32
    %c0_i32_0 = arith.constant 0 : i32
    %c0_i32_1 = arith.constant 0 : i32
    return %c0_i32, %c0_i32_0 : i32, i32
  }
  func.func @transform_8(%arg0: i32) -> (i32, i32) {
    %c0_i32 = arith.constant 0 : i32
    %c0_i32_0 = arith.constant 0 : i32
    %c0_i32_1 = arith.constant 0 : i32
    return %c0_i32, %c0_i32_0 : i32, i32
  }
  func.func @transform_9(%arg0: i32) -> (i32, i32) {
    %c0_i32 = arith.constant 0 : i32
    %c0_i32_0 = arith.constant 0 : i32
    return %arg0, %c0_i32 : i32, i32
  }
}

</mosaic_0001>

<bundles_post_ra>
// kernel: tpu_custom_call.1
= control target key start
LH: loop header
LB: loop body
LE: loop exit
PB: predicated region body
PF: predicated region fallthrough
CT: control target
= control target key end

     0   :  { %s4923_s0 = inlined_call_operand.hbm [shape: bf16[256,128], index: 0, kind: input, shape index: {}]   ;;  %s4924_s1 = inlined_call_operand.hbm [shape: bf16[128,640], index: 1, kind: input, shape index: {}]   ;;  %s4925_s2 = inlined_call_operand.vmem [shape: f32[1,640], index: 2, kind: input, shape index: {}]   ;;  %s4926_s3 = inlined_call_operand.hbm [shape: bf16[512,128], index: 3, kind: input, shape index: {}]   ;;  %s4927_s4 = inlined_call_operand.vmem [shape: f32[1,128], index: 4, kind: input, shape index: {}]   ;;  %s4928_s5 = inlined_call_operand.hbm [shape: bf16[128,640], index: 5, kind: input, shape index: {}]   ;;  %s4929_s6 = inlined_call_operand.vmem [shape: f32[1,640], index: 6, kind: input, shape index: {}]   ;;  %s4930_s7 = inlined_call_operand.hbm [shape: bf16[512,128], index: 7, kind: input, shape index: {}]   ;;  %s4931_s8 = inlined_call_operand.vmem [shape: f32[1,128], index: 8, kind: input, shape index: {}]   ;;  %s4932_s9 = inlined_call_operand.hbm [shape: bf16[256,128], index: 9, kind: output, shape index: {}]  }
   0x1   :  { %4939 = sst [smem:[#allocation18_spill]] %s4932_s9 }
   0x2   :  { %14 = vsyncpa [#allocation3], 0 }
   0x3   :  { %16 = vsyncpa [#allocation3 + $0x1], 0 }
   0x4   :  { %17 = vsyncpa [#allocation6], 0 }
   0x5   :  { %18 = vsyncpa [#allocation9], 0 }
   0x6   :  { %19 = vsyncpa [#allocation4], 0 }
   0x7   :  { %21 = vsyncpa [#allocation4 + $0x1], 0  ;;  %s4207_s30 = smov 0   ;;  %s4209_s10 = smov 0  }
   0x8   :  { %s4211_s11 = smov 0   ;;  %s4213_s12 = smov 0  }
   0x9 LB: > { %4940 = sst [smem:[#allocation16_spill]] %s4130_s30  ;;  %s4228_s13 = sadd.s32 4294967295, %s4142_s12   ;;  %s4142_s12 = sphi %s4213_s12, %s4964_s12   ;;  %s4138_s11 = sphi %s4211_s11, %s4963_s11   ;;  %s4134_s10 = sphi %s4209_s10, %s4962_s10   ;;  %s4130_s30 = sphi %s4207_s30, %s4961_s30  }
   0xa   : > { %s3039_s14 = sadd.s32 4294967294, %s4142_s12   ;;  %p47_p0 = scmp.ne.s32.totalorder %s4134_s10, %s4130_s30 }
   0xb   : > { %p4933_p1 = scmp.eq.s32.totalorder %s4228_s13, 0  ;;  %p245_p3 = scmp.eq.s32.totalorder %s3039_s14, 1 }
   0xc   : > { %p3040_p5 = scmp.ge.s32.totalorder %s4142_s12, 1  ;;  %p252_p7 = scmp.lt.s32.totalorder %s4142_s12, 3 }
   0xd   : > { %p4237_p4 = por %p4933_p1, %p47_p0  ;;  %p4242_p6 = por %p245_p3, %p47_p0 }
   0xe   : > { %p4247_p8 = pnand %p3040_p5, %p252_p7  ;;  %s4144_s18 = smov [#allocation5]  }
   0xf   : > { %s4941_s15 = scalar_select %p4237_p4, 1, 0 }
  0x10   : > { %s4942_s16 = scalar_select %p4242_p6, 1, 0 }
  0x11   : > { %s4944_s17 = scalar_select %p4247_p8, 1, 0 }
  0x12   : > { %4943 = sst [smem:[#allocation17_spill]] %s4942_s16  ;;  %s264_s19 = sshll.u32 %s4144_s18, 4  ;;  %s4251_s19 = int_to_ptr.vmem [resolvable:$true] %s264_s19 }
  0x13   : > { %p3668_p9 = pneg %p4247_p8  ;;  %s4145_s21 = smov [#allocation8]  }
  0x14   : > { %s296_s22 = sshll.u32 %s4145_s21, 4  ;;  %s4146_s23 = smov [#allocation7]   ;;  %s4262_s22 = int_to_ptr.vmem [resolvable:$true] %s296_s22 }
  0x15   : > { %p4258_p11 = pnand %p3668_p9, %p4933_p1  ;;  %s4264_s24 = sshll.u32 %s4146_s23, 4  ;;  %s281_s24 = int_to_ptr.vmem [resolvable:$true] %s4264_s24 }
  0x16   : > { %s3926_s27 = scalar_lea.hbm %s4924_s1, 5120 }
  0x17   : > { %p3927_p12 = scmp.ne.s32.totalorder %s4924_s1, %s3926_s27  ;;  %p4274_p13 = pneg %p4258_p11 }
  0x18   : > { %p3933_p5 = scmp.lt.u32.totalorder %s3926_s27, %s4924_s1 }
  0x19   : > { %p3929_p0 = pnand %p4274_p13, %p3927_p12 }
  0x1b   : > { %p3930_p3 = pneg %p3929_p0 }
  0x1d   : > { %p3935_p7 = pnand %p3933_p5, %p3930_p3 }
  0x1f   : > { %3938 = shalt.err (!%p3935_p7)
}
  0x20   : > { %s3939_s23 = scalar_lea.vmem %s4251_s19, 5120  ;;  %p3947_p2 = scmp.lt.s32.totalorder %s4251_s19, %s4251_s19 }
  0x21   : > { %p3940_p9 = scmp.ne.s32.totalorder %s4251_s19, %s3939_s23  ;;  %p3948_p6 = scmp.lt.s32.totalorder %s3939_s23, %s3939_s23 }
  0x23   : > { %p3942_p10 = pnand %p3940_p9, %p4274_p13  ;;  %p3949_p12 = por %p3948_p6, %p3947_p2 }
  0x25   : > { %p3943_p1 = pneg %p3942_p10 }
  0x27   : > { %p3950_p0 = pnand %p3949_p12, %p3943_p1 }
  0x29   : > { %3953 = shalt.err (!%p3950_p0)
}
  0x2a   : > { %s4147_s25 = smov 320   ;;  %s4148_s26 = smov 20  }
  0x2b   : > { %3671 = dma.hbm_to_vmem [thread:$0]  (!%p4258_p11), %s4924_s1, 5120, %s4251_s19, [#allocation6], %s4147_s25, %s4147_s25, %s4148_s26  }
  0x2c   : > { %s3954_s21 = scalar_lea.hbm %s4928_s5, 5120 }
  0x2d   : > { %p3955_p2 = scmp.ne.s32.totalorder %s4928_s5, %s3954_s21  ;;  %p3961_p10 = scmp.lt.u32.totalorder %s3954_s21, %s4928_s5 }
  0x2f   : > { %p3957_p1 = pnand %p3955_p2, %p4274_p13 }
  0x31   : > { %p3958_p6 = pneg %p3957_p1 }
  0x33   : > { %p3963_p3 = pnand %p3961_p10, %p3958_p6 }
  0x35   : > { %3966 = shalt.err (!%p3963_p3)
}
  0x36   : > { %s3967_s19 = scalar_lea.vmem %s4262_s22, 5120  ;;  %p3975_p12 = scmp.lt.s32.totalorder %s4262_s22, %s4262_s22 }
  0x37   : > { %p3968_p5 = scmp.ne.s32.totalorder %s4262_s22, %s3967_s19  ;;  %p3976_p0 = scmp.lt.s32.totalorder %s3967_s19, %s3967_s19 }
  0x39   : > { %p3970_p7 = pnand %p3968_p5, %p4274_p13  ;;  %p3977_p2 = por %p3976_p0, %p3975_p12 }
  0x3b   : > { %p3971_p9 = pneg %p3970_p7 }
  0x3d   : > { %p3978_p1 = pnand %p3977_p2, %p3971_p9 }
  0x3f   : > { %3981 = shalt.err (!%p3978_p1)
}
  0x40   : > { %3677 = dma.hbm_to_vmem [thread:$0]  (!%p4258_p11), %s4928_s5, 5120, %s4262_s22, [#allocation9], %s4147_s25, %s4147_s25, %s4148_s26  }
  0x41   : > { %s3982_s28 = scalar_lea.hbm %s4926_s3, 4096 }
  0x42   : > { %p3983_p6 = scmp.ne.s32.totalorder %s4926_s3, %s3982_s28  ;;  %p3989_p5 = scmp.lt.u32.totalorder %s3982_s28, %s4926_s3 }
  0x44   : > { %p3985_p10 = pnand %p3983_p6, %p4274_p13 }
  0x46   : > { %p3986_p3 = pneg %p3985_p10 }
  0x48   : > { %p3991_p7 = pnand %p3989_p5, %p3986_p3 }
  0x4a   : > { %3994 = shalt.err (!%p3991_p7)
}
  0x4b   : > { %s3995_s19 = scalar_lea.vmem %s281_s24, 4096  ;;  %p4003_p2 = scmp.lt.s32.totalorder %s281_s24, %s281_s24 }
  0x4c   : > { %p3996_p9 = scmp.ne.s32.totalorder %s281_s24, %s3995_s19  ;;  %p4004_p1 = scmp.lt.s32.totalorder %s3995_s19, %s3995_s19 }
  0x4e   : > { %p3998_p12 = pnand %p3996_p9, %p4274_p13  ;;  %p4005_p4 = por %p4004_p1, %p4003_p2 }
  0x50   : > { %p3999_p0 = pneg %p3998_p12 }
  0x52   : > { %p4006_p8 = pnand %p4005_p4, %p3999_p0 }
  0x54   : > { %4009 = shalt.err (!%p4006_p8)
}
  0x55   : > { %s4149_s22 = smov 64   ;;  %s4150_s25 = smov 4  }
  0x56   : > { %3674 = dma.hbm_to_vmem [thread:$0]  (!%p4258_p11), %s4926_s3, 4096, %s281_s24, [#allocation6], %s4149_s22, %s4149_s22, %s4150_s25  }
  0x57   : > { %s4151_s30 = smov [#allocation10]   ;;  %s4010_s29 = scalar_lea.hbm %s4930_s7, 4096 }
  0x58   : > { %s312_s16 = sshll.u32 %s4151_s30, 4  ;;  %p4011_p4 = scmp.ne.s32.totalorder %s4930_s7, %s4010_s29  ;;  %s313_s16 = int_to_ptr.vmem [resolvable:$true] %s312_s16 }
  0x59   : > { %p4017_p10 = scmp.lt.u32.totalorder %s4010_s29, %s4930_s7 }
  0x5a   : > { %p4013_p8 = pnand %p4011_p4, %p4274_p13 }
  0x5c   : > { %p4014_p6 = pneg %p4013_p8 }
  0x5e   : > { %p4019_p3 = pnand %p4017_p10, %p4014_p6 }
  0x60   : > { %4022 = shalt.err (!%p4019_p3)
}
  0x61   : > { %s4023_s24 = scalar_lea.vmem %s313_s16, 4096  ;;  %p4031_p12 = scmp.lt.s32.totalorder %s313_s16, %s313_s16 }
  0x62   : > { %p4024_p5 = scmp.ne.s32.totalorder %s313_s16, %s4023_s24  ;;  %p4032_p0 = scmp.lt.s32.totalorder %s4023_s24, %s4023_s24 }
  0x64   : > { %p4026_p7 = pnand %p4024_p5, %p4274_p13  ;;  %p4033_p2 = por %p4032_p0, %p4031_p12 }
  0x66   : > { %p4027_p9 = pneg %p4026_p7 }
  0x68   : > { %p4034_p1 = pnand %p4033_p2, %p4027_p9 }
  0x6a   : > { %4037 = shalt.err (!%p4034_p1)
}
  0x6b   : > { %3680 = dma.hbm_to_vmem [thread:$0]  (!%p4258_p11), %s4930_s7, 4096, %s313_s16, [#allocation9], %s4149_s22, %s4149_s22, %s4150_s25  }
  0x6c   : > { %s4362_s14 = sadd.s32 1, %s4142_s12   ;;  %s34_s20 = sadd.s32 1, %s4138_s11 }
  0x6d   : > { %s31_s30 = ssub.s32 %s4142_s12, %s4362_s14  ;;  %p41_p13 = scmp.ne.s32.totalorder %s4138_s11, %s4134_s10 }
  0x6e   : > { %p32_p4 = scmp.eq.s32.totalorder %s31_s30, 0  ;;  %p42_p8 = scmp.eq.s32.totalorder %s4142_s12, 0 }
  0x6f   : > { %p4947_p6 = scmp.eq.s32.totalorder %s4228_s13, 1  ;;  %p3693_p3 = scmp.lt.s32.totalorder %s4142_s12, 2 }
  0x70   : > { %s4378_s28 = scalar_select %p32_p4, %s4138_s11, %s34_s20  }
  0x71   : > { %p4372_p10 = por %p4947_p6, %p41_p13  ;;  %p43_p5 = por %p42_p8, %p41_p13 }
  0x72   : > { %s329_s29 = sand.u32 1, %s4138_s11   ;;  %s3231_s16 = sshll.u32 %s4142_s12, 10 }
  0x73   : > { %s3046_s18 = sshll.u32 %s329_s29, 6  ;;  %s4385_s19 = scalar_lea.hbm %s4923_s0, %s3231_s16 }
  0x74   : > { %s333_s24 = scalar_lea.vmem [#allocation2], %s3046_s18  ;;  %p4389_p11 = pnand %p3693_p3, %p43_p5 }
  0x75   : > { %s340_s26 = sshll.u32 %s333_s24, 4  ;;  %s4393_s20 = scalar_lea.sflag [#allocation3], %s329_s29  ;;  %s4387_s26 = int_to_ptr.vmem [resolvable:$true] %s340_s26 }
  0x76   : > { %s4038_s30 = scalar_lea.hbm %s4385_s19, 1024  ;;  %p4040_p9 = pneg %p4389_p11 }
  0x77   : > { %p4039_p7 = scmp.ne.s32.totalorder %s4385_s19, %s4038_s30  ;;  %s4043_s21 = scalar_lea.hbm %s4923_s0, 2048 }
  0x78   : > { %p4044_p2 = scmp.lt.u32.totalorder %s4385_s19, %s4923_s0  ;;  %p4045_p1 = scmp.lt.u32.totalorder %s4043_s21, %s4038_s30 }
  0x79   : > { %p4041_p12 = pnand %p4040_p9, %p4039_p7  ;;  %p4047_p4 = scmp.lt.u32.totalorder %s4038_s30, %s4385_s19 }
  0x7a   : > { %p4046_p13 = por %p4045_p1, %p4044_p2 }
  0x7b   : > { %p4042_p0 = pneg %p4041_p12 }
  0x7c   : > { %p4048_p8 = por %p4047_p4, %p4046_p13 }
  0x7e   : > { %p4049_p6 = pnand %p4048_p8, %p4042_p0 }
  0x80   : > { %4052 = shalt.err (!%p4049_p6)
}
  0x81   : > { %s4053_s29 = scalar_lea.vmem %s4387_s26, 1024  ;;  %s4152_s18 = smov [#allocation2]  }
  0x82   : > { %p4054_p3 = scmp.ne.s32.totalorder %s4387_s26, %s4053_s29  ;;  %s4058_s16 = sshll.u32 %s4152_s18, 4  ;;  %s4059_s16 = int_to_ptr.vmem [resolvable:$false] %s4058_s16 }
  0x83   : > { %s4060_s23 = scalar_lea.vmem %s4059_s16, 2048  ;;  %p4061_p12 = scmp.lt.s32.totalorder %s4387_s26, %s4059_s16 }
  0x84   : > { %p4056_p5 = pnand %p4054_p3, %p4040_p9  ;;  %p4062_p2 = scmp.lt.s32.totalorder %s4060_s23, %s4053_s29 }
  0x86   : > { %p4057_p7 = pneg %p4056_p5  ;;  %p4063_p1 = por %p4062_p2, %p4061_p12 }
  0x88   : > { %p4064_p13 = pnand %p4063_p1, %p4057_p7 }
  0x8a   : > { %4067 = shalt.err (!%p4064_p13)
}
  0x8b   : > { %3684 = dma.hbm_to_vmem [thread:$0]  (!%p4389_p11), %s4385_s19, 1024, %s4387_s26, %s4393_s20, %s4149_s22, %s4149_s22, %s4150_s25  }
  0x8c   : > { %p4950_p9 = scmp.ne.s32.totalorder %s4944_s17, 0 }
  0x8d   : > { %s4427_s30 = sand.u32 (!%p4950_p9), 1, %s4134_s10   ;;  %p4951_p0 = scmp.ne.s32.totalorder (!%p4950_p9), %s4941_s15, 0 }
  0x8e   : > { %352 = sbr.rel (%p4950_p9) target bundleno = 1156 (0x484), region = 56  ;;  %s3050_s21 = sshll.u32 (!%p4950_p9), %s4427_s30, 6 }
  0x8f   : > { %s355_s24 = scalar_lea.sflag (!%p4950_p9), [#allocation3], %s4427_s30  ;;  %s4433_s9 = scalar_lea.vmem (!%p4950_p9), [#allocation2], %s3050_s21 }
  0x95   : > { %4113 = dma.done.wait (%p4951_p0), %s355_s24, 1024  }
  0x96   : > { %4115 = vsyncadd (%p4951_p0), %s355_s24, 4294966272  ;;  %p4952_p11 = scmp.eq.s32.totalorder %s4228_s13, 0 }
  0x98   : > { %4117 = dma.done.wait (%p4952_p11), [#allocation6], 9216   ;;  %p4953_p4 = pmov %p4952_p11 }
  0x9a   : > { %4119 = vsyncadd (%p4953_p4), [#allocation6], 4294958080  ;;  %p4954_p8 = pmov %p4953_p4 }
  0x9b   : > { %p4955_p6 = pmov %p4953_p4 }
  0x9c   : > { %4121 = dma.done.wait (%p4954_p8), [#allocation9], 9216  }
  0x9d   : > { %4123 = vsyncadd (%p4955_p6), [#allocation9], 4294958080  ;;  %v4153_v0 = vmov 0   ;;  %v3742_v1 = vld [vmem:[#allocation5 + $0x4] ss:$20 sps:$4 sm:$0xff]   ;;  %v3805_v39 = vld [vmem:[#allocation7 + $0x48] sm:$0xff]  }
  0x9e   : > { %791 = vmatprep.mubr.bf16.mxu0 %v4153_v0  ;;  %904 = vmatprep.mubr.bf16.mxu1 %v4153_v0  ;;  %v3744_v2 = vld [vmem:[#allocation5 + $0xc] ss:$20 sps:$4 sm:$0xff]   ;;  %v3747_v4 = vld [vmem:[#allocation5 + $0x8] ss:$20 sps:$4 sm:$0xff]   ;;  %v3753_v8 = vld [vmem:[#allocation5 + $0x30] ss:$20 sps:$4 sm:$0xff]  }
  0x9f   : > { %759 = vmatprep.subr.bf16.mxu0 %v3742_v1  ;;  %v3746_v3 = vld [vmem:[#allocation5] ss:$20 sps:$4 sm:$0xff]   ;;  %872 = vmatprep.subr.bf16.mxu1 %v3744_v2  ;;  %v3752_v7 = vld [vmem:[#allocation5 + $0x28] ss:$20 sps:$4 sm:$0xff]   ;;  %v3758_v11 = vld [vmem:[#allocation5 + $0x50] ss:$20 sps:$4 sm:$0xff]  }
  0xa0   : > { %v3748_v5 = vld [vmem:[#allocation5 + $0x2c] ss:$20 sps:$4 sm:$0xff]   ;;  %760 = vmatpush1.bf16.msra.mxu0 %v3746_v3  ;;  %873 = vmatpush1.bf16.msra.mxu1 %v3747_v4  ;;  %v3750_v6 = vld [vmem:[#allocation5 + $0x34] ss:$20 sps:$4 sm:$0xff]   ;;  %v3756_v10 = vld [vmem:[#allocation5 + $0x5c] ss:$20 sps:$4 sm:$0xff]  }
  0xa1   : > { %761 = vmatprep.subr.bf16.mxu0 %v3748_v5  ;;  %874 = vmatprep.subr.bf16.mxu1 %v3750_v6  ;;  %v3754_v9 = vld [vmem:[#allocation5 + $0x54] ss:$20 sps:$4 sm:$0xff]   ;;  %v3759_v12 = vld [vmem:[#allocation5 + $0x58] ss:$20 sps:$4 sm:$0xff]   ;;  %v3760_v13 = vld [vmem:[#allocation5 + $0x7c] ss:$20 sps:$4 sm:$0xff]  }
  0xa2   : > { %v3762_v14 = vld [vmem:[#allocation5 + $0x84] ss:$20 sps:$4 sm:$0xff]   ;;  %v3765_v16 = vld [vmem:[#allocation5 + $0x80] ss:$20 sps:$4 sm:$0xff]   ;;  %v3771_v20 = vld [vmem:[#allocation5 + $0xa8] ss:$20 sps:$4 sm:$0xff]  }
  0xa3   : > { %v3764_v15 = vld [vmem:[#allocation5 + $0x78] ss:$20 sps:$4 sm:$0xff]   ;;  %v3770_v19 = vld [vmem:[#allocation5 + $0xa0] ss:$20 sps:$4 sm:$0xff]   ;;  %v3776_v23 = vld [vmem:[#allocation5 + $0xc8] ss:$20 sps:$4 sm:$0xff]  }
  0xa4   : > { %762 = vmatpush1.bf16.msra.mxu0 %v3752_v7  ;;  %875 = vmatpush1.bf16.msra.mxu1 %v3753_v8  ;;  %v3766_v17 = vld [vmem:[#allocation5 + $0xa4] ss:$20 sps:$4 sm:$0xff]   ;;  %v3768_v18 = vld [vmem:[#allocation5 + $0xac] ss:$20 sps:$4 sm:$0xff]   ;;  %v3774_v22 = vld [vmem:[#allocation5 + $0xd4] ss:$20 sps:$4 sm:$0xff]  }
  0xa5   : > { %763 = vmatprep.subr.bf16.mxu0 %v3754_v9  ;;  %876 = vmatprep.subr.bf16.mxu1 %v3756_v10  ;;  %v3772_v21 = vld [vmem:[#allocation5 + $0xcc] ss:$20 sps:$4 sm:$0xff]   ;;  %v3777_v24 = vld [vmem:[#allocation5 + $0xd0] ss:$20 sps:$4 sm:$0xff]   ;;  %v3778_v25 = vld [vmem:[#allocation5 + $0xf4] ss:$20 sps:$4 sm:$0xff]  }
  0xa6   : > { %v3780_v26 = vld [vmem:[#allocation5 + $0xfc] ss:$20 sps:$4 sm:$0xff]   ;;  %v3783_v28 = vld [vmem:[#allocation5 + $0xf8] ss:$20 sps:$4 sm:$0xff]   ;;  %v3789_v32 = vld [vmem:[#allocation5 + $0x120] ss:$20 sps:$4 sm:$0xff]  }
  0xa7   : > { %v3782_v27 = vld [vmem:[#allocation5 + $0xf0] ss:$20 sps:$4 sm:$0xff]   ;;  %v3788_v31 = vld [vmem:[#allocation5 + $0x118] ss:$20 sps:$4 sm:$0xff]   ;;  %v3800_v38 = vld [vmem:[#allocation5 + $0x60] ss:$20 sps:$4 sm:$0xff]  }
  0xa8   : > { %764 = vmatpush1.bf16.msra.mxu0 %v3758_v11  ;;  %877 = vmatpush1.bf16.msra.mxu1 %v3759_v12  ;;  %v3784_v29 = vld [vmem:[#allocation5 + $0x11c] ss:$20 sps:$4 sm:$0xff]   ;;  %v3786_v30 = vld [vmem:[#allocation5 + $0x124] ss:$20 sps:$4 sm:$0xff]   ;;  %v3806_v40 = vld [vmem:[#allocation7 + $0x8] sm:$0xff]   ;;  %s4825_s18 = scalar_lea.vmem [#allocation11], %s3050_s21 }
  0xa9   : > { %765 = vmatprep.subr.bf16.mxu0 %v3760_v13  ;;  %878 = vmatprep.subr.bf16.mxu1 %v3762_v14  ;;  %v3798_v33 = vld [vmem:[#allocation5 + $0x10] ss:$20 sps:$4 sm:$0xff]   ;;  %v3799_v35 = vld [vmem:[#allocation5 + $0x38] ss:$20 sps:$4 sm:$0xff]   ;;  %v3801_v42 = vld [vmem:[#allocation5 + $0x88] ss:$20 sps:$4 sm:$0xff]  }
  0xaa   : > { %v4450_v34 = vld [vmem:[%s4433_s9] sm:$0xff]   ;;  %v4457_v41 = vld [vmem:[%s4433_s9 + $0x8] sm:$0xff]   ;;  %v3808_v43 = vld [vmem:[#allocation7 + $0x50] sm:$0xff]   ;;  %s3248_s16 = sshll.u32 %s4228_s13, 10  ;;  %s2928_s23 = sshll.u32 %s4825_s18, 4  ;;  %s4878_s23 = int_to_ptr.vmem [resolvable:$true] %s2928_s23 }
  0xab   : > { %v3802_v36 = vld [vmem:[#allocation7 + $0x40] sm:$0xff]   ;;  %v3809_v44 = vld [vmem:[#allocation7 + $0x10] sm:$0xff]   ;;  %v3811_v45 = vld [vmem:[#allocation7 + $0x58] sm:$0xff]   ;;  %s2915_s17 = scalar_lea.sflag [#allocation4], %s4427_s30  ;;  %s4068_s22 = scalar_lea.vmem %s4878_s23, 1024 }
  0xac   : > { %766 = vmatpush1.bf16.msra.mxu0 %v3764_v15  ;;  %879 = vmatpush1.bf16.msra.mxu1 %v3765_v16  ;;  %v3803_v37 = vld [vmem:[#allocation7] sm:$0xff]   ;;  %v3812_v47 = vld [vmem:[#allocation7 + $0x18] sm:$0xff]   ;;  %v3792_v48 = vld [vmem:[%s4433_s9 + $0x10] sm:$0xff]   ;;  %p4069_p3 = scmp.ne.s32.totalorder %s4878_s23, %s4068_s22  ;;  %s4154_s13 = smov [#allocation11]  }
  0xad   : > { %767 = vmatprep.subr.bf16.mxu0 %v3766_v17  ;;  %880 = vmatprep.subr.bf16.mxu1 %v3768_v18  ;;  %v3804_v46 = vld [vmem:[#allocation5 + $0xb0] ss:$20 sps:$4 sm:$0xff]   ;;  %v3807_v49 = vld [vmem:[#allocation5 + $0xd8] ss:$20 sps:$4 sm:$0xff]   ;;  %v3810_v53 = vld [vmem:[#allocation5 + $0x100] ss:$20 sps:$4 sm:$0xff]  }
  0xae   : > { %v3814_v50 = vld [vmem:[#allocation7 + $0x60] sm:$0xff]   ;;  %v3820_v52 = vld [vmem:[#allocation7 + $0x68] sm:$0xff]   ;;  %v3793_v55 = vld [vmem:[%s4433_s9 + $0x18] sm:$0xff]   ;;  %p4070_p5 = pnand %p4069_p3, %p4372_p10  ;;  %s4072_s25 = sshll.u32 %s4154_s13, 4  ;;  %s4073_s25 = int_to_ptr.vmem [resolvable:$false] %s4072_s25 }
  0xaf   : > { %v3815_v51 = vld [vmem:[#allocation7 + $0x20] sm:$0xff]   ;;  %v3821_v54 = vld [vmem:[#allocation7 + $0x28] sm:$0xff]   ;;  %v3826_v57 = vld [vmem:[#allocation7 + $0x70] sm:$0xff]   ;;  %s4074_s19 = scalar_lea.vmem %s4073_s25, 2048  ;;  %p4075_p12 = scmp.lt.s32.totalorder %s4878_s23, %s4073_s25 }
  0xb0   : > { %768 = vmatpush1.bf16.msra.mxu0 %v3770_v19  ;;  %881 = vmatpush1.bf16.msra.mxu1 %v3771_v20  ;;  %v3813_v56 = vld [vmem:[#allocation5 + $0x128] ss:$20 sps:$4 sm:$0xff]   ;;  %v3827_v58 = vld [vmem:[#allocation7 + $0x30] sm:$0xff]   ;;  %v3794_v59 = vld [vmem:[%s4433_s9 + $0x20] sm:$0xff]   ;;  %v478_v20 = vlaneseq  ;;  %p4071_p7 = pneg %p4070_p5  ;;  %p4076_p2 = scmp.lt.s32.totalorder %s4074_s19, %s4068_s22 }
  0xb1   : > { %769 = vmatprep.subr.bf16.mxu0 %v3772_v21  ;;  %882 = vmatprep.subr.bf16.mxu1 %v3774_v22  ;;  %v3816_v60 = vld [vmem:[#allocation7 + $0xc0] sm:$0xff]   ;;  %v3795_v61 = vld [vmem:[%s4433_s9 + $0x28] sm:$0xff]   ;;  %v3796_v62 = vld [vmem:[%s4433_s9 + $0x30] sm:$0xff]  }
  0xb2   : > { %v3797_v63 = vld [vmem:[%s4433_s9 + $0x38] sm:$0xff]   ;;  %v3817_v1 = vld [vmem:[#allocation7 + $0x80] sm:$0xff]   ;;  %v3818_v2 = vld [vmem:[#allocation7 + $0xc8] sm:$0xff]   ;;  %v4481_v21 = vshrl.u32 %v478_v20, 7  ;;  %s4956_s9 = sld [smem:[#allocation18_spill]]  ;;  %p4077_p1 = por %p4076_p2, %p4075_p12 }
  0xb3   : > { %v3819_v3 = vld [vmem:[#allocation7 + $0x88] sm:$0xff]   ;;  %v3822_v4 = vld [vmem:[#allocation7 + $0xd0] sm:$0xff]   ;;  %v3824_v6 = vld [vmem:[#allocation7 + $0xd8] sm:$0xff]  }
  0xb4   : > { %770 = vmatpush1.bf16.msra.mxu0 %v3776_v23  ;;  %883 = vmatpush1.bf16.msra.mxu1 %v3777_v24  ;;  %v3823_v5 = vld [vmem:[#allocation7 + $0x90] sm:$0xff]   ;;  %v3825_v7 = vld [vmem:[#allocation7 + $0x98] sm:$0xff]   ;;  %v3828_v8 = vld [vmem:[#allocation7 + $0xe0] sm:$0xff]   ;;  %v480_v22 = vsub.s32 0, %v4481_v21  ;;  %v488_v23 = vsub.s32 2, %v4481_v21  ;;  %p4078_p13 = pnand %p4077_p1, %p4071_p7 }
  0xb5   : > { %771 = vmatprep.subr.bf16.mxu0 %v3778_v25  ;;  %884 = vmatprep.subr.bf16.mxu1 %v3780_v26  ;;  %v3829_v9 = vld [vmem:[#allocation7 + $0xa0] sm:$0xff]   ;;  %v3830_v10 = vld [vmem:[#allocation7 + $0xe8] sm:$0xff]   ;;  %v3834_v12 = vld [vmem:[#allocation7 + $0xf0] sm:$0xff]   ;;  %v484_v25 = vsub.s32 1, %v4481_v21  ;;  %v492_v26 = vsub.s32 3, %v4481_v21 }
  0xb6   : > { %v3831_v11 = vld [vmem:[#allocation7 + $0xa8] sm:$0xff]   ;;  %v3835_v13 = vld [vmem:[#allocation7 + $0xb0] sm:$0xff]   ;;  %v3832_v14 = vld [vmem:[#allocation7 + $0x78] sm:$0xff]  }
  0xb7   : > { %v3836_v15 = vld [vmem:[#allocation7 + $0xf8] sm:$0xff]   ;;  %v3843_v19 = vld [vmem:[#allocation8 + $0xc] ss:$20 sps:$4 sm:$0xff]   ;;  %v3852_v20 = vld [vmem:[#allocation8 + $0x54] ss:$20 sps:$4 sm:$0xff]  }
  0xb8   : > { %772 = vmatpush1.bf16.msra.mxu0 %v3782_v27  ;;  %885 = vmatpush1.bf16.msra.mxu1 %v3783_v28  ;;  %v3833_v16 = vld [vmem:[#allocation7 + $0x38] sm:$0xff]   ;;  %v4488_v24 = vld [vmem:[%s4925_s2] sm:$0x1f]  ;;  %s4876_s15 = scalar_lea.hbm %s4956_s9, %s3248_s16 }
  0xb9   : > { %773 = vmatprep.subr.bf16.mxu0 %v3784_v29  ;;  %886 = vmatprep.subr.bf16.mxu1 %v3786_v30  ;;  %v3837_v17 = vld [vmem:[#allocation7 + $0xb8] sm:$0xff]   ;;  %v4495_v27 = vrot.slane %v4488_v24, %v480_v22  ;;  %v4500_v28 = vrot.slane %v4488_v24, %v488_v23  ;;  %v4505_v29 = vrot.slane %v4488_v24, %v484_v25 }
  0xba   : > { %v3840_v18 = vld [vmem:[#allocation8 + $0x4] ss:$20 sps:$4 sm:$0xff]   ;;  %v4510_v30 = vrot.slane %v4488_v24, %v492_v26 }
  0xbc   : > { %774 = vmatpush1.bf16.msra.mxu0 %v3788_v31  ;;  %887 = vmatpush1.bf16.msra.mxu1 %v3789_v32 }
  0xbd   : > { %3584 = vmatprep.subr.bf16.mxu0 %v3798_v33  ;;  %3312 = vmatprep.subr.bf16.mxu1 %v3802_v36 }
  0xbf   : > { %792 = vmatmul.mubr.bf16.vlgmr.msra.gmra.mrb[0].mxu0 %v4450_v34  ;;  %905 = vmatmul.mubr.bf16.vlgmr.msra.gmra.mrb[0].mxu1 %v4450_v34 }
  0xc0   : > { %801 = vmatprep.mubr.bf16.mxu0 %v4153_v0  ;;  %914 = vmatprep.mubr.bf16.mxu1 %v4153_v0 }
  0xc1   : > { %3585 = vmatpush3.bf16.msra.mxu0 %v3798_v33  ;;  %3313 = vmatpush3.bf16.msra.mxu1 %v3803_v37 }
  0xc2   : > { %3586 = vmatprep.subr.bf16.mxu0 %v3799_v35  ;;  %3314 = vmatprep.subr.bf16.mxu1 %v3805_v39 }
  0xc5   : > { %3587 = vmatpush3.bf16.msra.mxu0 %v3799_v35  ;;  %3315 = vmatpush3.bf16.msra.mxu1 %v3806_v40 }
  0xc6   : > { %3588 = vmatprep.subr.bf16.mxu0 %v3800_v38  ;;  %3316 = vmatprep.subr.bf16.mxu1 %v3808_v43 }
  0xc7   : > { %802 = vmatmul.mubr.bf16.gmra.mrb[4].mxu0 %v4457_v41  ;;  %915 = vmatmul.mubr.bf16.gmra.mrb[4].mxu1 %v4457_v41 }
  0xc8   : > { %811 = vmatprep.mubr.bf16.mxu0 %v4153_v0  ;;  %924 = vmatprep.mubr.bf16.mxu1 %v4153_v0 }
  0xc9   : > { %3589 = vmatpush3.bf16.msra.mxu0 %v3800_v38  ;;  %3317 = vmatpush3.bf16.msra.mxu1 %v3809_v44 }
  0xca   : > { %3590 = vmatprep.subr.bf16.mxu0 %v3801_v42  ;;  %3318 = vmatprep.subr.bf16.mxu1 %v3811_v45 }
  0xcd   : > { %3591 = vmatpush3.bf16.msra.mxu0 %v3801_v42  ;;  %3319 = vmatpush3.bf16.msra.mxu1 %v3812_v47 }
  0xce   : > { %3592 = vmatprep.subr.bf16.mxu0 %v3804_v46  ;;  %3320 = vmatprep.subr.bf16.mxu1 %v3814_v50 }
  0xcf   : > { %812 = vmatmul.mubr.bf16.gmra.mrb[8].mxu0 %v3792_v48  ;;  %925 = vmatmul.mubr.bf16.gmra.mrb[8].mxu1 %v3792_v48 }
  0xd0   : > { %821 = vmatprep.mubr.bf16.mxu0 %v4153_v0  ;;  %934 = vmatprep.mubr.bf16.mxu1 %v4153_v0 }
  0xd1   : > { %3593 = vmatpush3.bf16.msra.mxu0 %v3804_v46  ;;  %3321 = vmatpush3.bf16.msra.mxu1 %v3815_v51 }
  0xd2   : > { %3594 = vmatprep.subr.bf16.mxu0 %v3807_v49  ;;  %3322 = vmatprep.subr.bf16.mxu1 %v3820_v52 }
  0xd5   : > { %3595 = vmatpush3.bf16.msra.mxu0 %v3807_v49  ;;  %3323 = vmatpush3.bf16.msra.mxu1 %v3821_v54 }
  0xd6   : > { %3596 = vmatprep.subr.bf16.mxu0 %v3810_v53  ;;  %3324 = vmatprep.subr.bf16.mxu1 %v3826_v57 }
  0xd7   : > { %822 = vmatmul.mubr.bf16.gmra.mrb[12].mxu0 %v3793_v55  ;;  %935 = vmatmul.mubr.bf16.gmra.mrb[12].mxu1 %v3793_v55 }
  0xd8   : > { %831 = vmatprep.mubr.bf16.mxu0 %v4153_v0  ;;  %944 = vmatprep.mubr.bf16.mxu1 %v4153_v0 }
  0xd9   : > { %3597 = vmatpush3.bf16.msra.mxu0 %v3810_v53  ;;  %3325 = vmatpush3.bf16.msra.mxu1 %v3827_v58 }
  0xda   : > { %3598 = vmatprep.subr.bf16.mxu0 %v3813_v56  ;;  %3326 = vmatprep.subr.bf16.mxu1 %v3832_v14 }
  0xdd   : > { %3599 = vmatpush3.bf16.msra.mxu0 %v3813_v56  ;;  %3327 = vmatpush3.bf16.msra.mxu1 %v3833_v16 }
  0xde   : > { %3376 = vmatprep.subr.bf16.mxu0 %v3816_v60  ;;  %1942 = vmatprep.subr.bf16.mxu1 %v3840_v18 }
  0xdf   : > { %832 = vmatmul.mubr.bf16.gmra.mrb[16].mxu0 %v3794_v59  ;;  %945 = vmatmul.mubr.bf16.gmra.mrb[16].mxu1 %v3794_v59 }
  0xe0   : > { %841 = vmatprep.mubr.bf16.mxu0 %v4153_v0  ;;  %954 = vmatprep.mubr.bf16.mxu1 %v4153_v0 }
  0xe7   : > { %842 = vmatmul.mubr.bf16.gmra.mrb[20].mxu0 %v3795_v61  ;;  %955 = vmatmul.mubr.bf16.gmra.mrb[20].mxu1 %v3795_v61 }
  0xe8   : > { %851 = vmatprep.mubr.bf16.mxu0 %v4153_v0  ;;  %964 = vmatprep.mubr.bf16.mxu1 %v4153_v0 }
  0xef   : > { %852 = vmatmul.mubr.bf16.gmra.mrb[24].mxu0 %v3796_v62  ;;  %965 = vmatmul.mubr.bf16.gmra.mrb[24].mxu1 %v3796_v62 }
  0xf0   : > { %861 = vmatprep.mubr.bf16.mxu0 %v4153_v0  ;;  %974 = vmatprep.mubr.bf16.mxu1 %v4153_v0 }
  0xf7   : > { %862 = vmatmul.mubr.bf16.gmra.mrb[28].mxu0 %v3797_v63  ;;  %975 = vmatmul.mubr.bf16.gmra.mrb[28].mxu1 %v3797_v63 }
  0xf8   : > { %3600 = vmatprep.mubr.bf16.mxu0 %v4450_v34 }
  0xff   : > { %3601 = vmatmul.mubr.bf16.vlgmr.msra.gmra.mrb[32].mxu0 %v4457_v41 }
 0x100   : > { %3377 = vmatpush3.bf16.msra.mxu0 %v3817_v1  ;;  %3604 = vmatprep.mubr.bf16.mxu0 %v3792_v48 }
 0x101   : > { %3378 = vmatprep.subr.bf16.mxu0 %v3818_v2 }
 0x104   : > { %3379 = vmatpush3.bf16.msra.mxu0 %v3819_v3 }
 0x105   : > { %3380 = vmatprep.subr.bf16.mxu0 %v3822_v4  ;;  %v3846_v4 = vld [vmem:[#allocation8 + $0x2c] ss:$20 sps:$4 sm:$0xff]  }
 0x107   : > { %3605 = vmatmul.mubr.bf16.gmra.mrb[36].mxu0 %v3793_v55 }
 0x108   : > { %3381 = vmatpush3.bf16.msra.mxu0 %v3823_v5  ;;  %3608 = vmatprep.mubr.bf16.mxu0 %v3794_v59  ;;  %v3849_v5 = vld [vmem:[#allocation8 + $0x34] ss:$20 sps:$4 sm:$0xff]  }
 0x109   : > { %3382 = vmatprep.subr.bf16.mxu0 %v3824_v6 }
 0x10c   : > { %3383 = vmatpush3.bf16.msra.mxu0 %v3825_v7 }
 0x10d   : > { %3384 = vmatprep.subr.bf16.mxu0 %v3828_v8 }
 0x10f   : > { %3609 = vmatmul.mubr.bf16.gmra.mrb[40].mxu0 %v3795_v61  ;;  %v3838_v61 = vld [vmem:[#allocation8] ss:$20 sps:$4 sm:$0xff]  }
 0x110   : > { %3385 = vmatpush3.bf16.msra.mxu0 %v3829_v9  ;;  %3612 = vmatprep.mubr.bf16.mxu0 %v3796_v62  ;;  %v3841_v62 = vld [vmem:[#allocation8 + $0x8] ss:$20 sps:$4 sm:$0xff]  }
 0x111   : > { %3386 = vmatprep.subr.bf16.mxu0 %v3830_v10 }
 0x114   : > { %3387 = vmatpush3.bf16.msra.mxu0 %v3831_v11 }
 0x115   : > { %3388 = vmatprep.subr.bf16.mxu0 %v3834_v12 }
 0x117   : > { %3613 = vmatmul.mubr.bf16.gmra.mrb[44].mxu0 %v3797_v63 }
 0x118   : > { %3389 = vmatpush3.bf16.msra.mxu0 %v3835_v13 }
 0x119   : > { %3390 = vmatprep.subr.bf16.mxu0 %v3836_v15  ;;  %v3844_v15 = vld [vmem:[#allocation8 + $0x28] ss:$20 sps:$4 sm:$0xff]  }
 0x11c   : > { %3391 = vmatpush3.bf16.msra.mxu0 %v3837_v17 }
 0x11d   : > { %2055 = vmatprep.subr.bf16.mxu0 %v3843_v19  ;;  %v3847_v19 = vld [vmem:[#allocation8 + $0x30] ss:$20 sps:$4 sm:$0xff]  }
 0x192   : > { %v793_v31 = vpop.f32.mrb[0].mxu0  ;;  %v906_v32 = vpop.f32.mrb[0].mxu1 }
 0x193   : > { %v794_v33 = vadd.f32 %v793_v31, %v4495_v27  ;;  %v907_v34 = vadd.f32 %v906_v32, %v4500_v28  ;;  %v795_v35 = vpop.f32.mrb[1].mxu0  ;;  %v908_v36 = vpop.f32.mrb[1].mxu1 }
 0x194   : > { %v796_v37 = vadd.f32 %v795_v35, %v4505_v29  ;;  %v909_v38 = vadd.f32 %v908_v36, %v4510_v30  ;;  %v797_v39 = vpop.f32.mrb[2].mxu0  ;;  %v910_v40 = vpop.f32.mrb[2].mxu1 }
 0x195   : > { %v1084_v41 = vmax.f32 %v907_v34, 0.0  ;;  %v798_v42 = vadd.f32 %v797_v39, %v4495_v27  ;;  %v911_v43 = vadd.f32 %v910_v40, %v4500_v28  ;;  %v799_v44 = vpop.f32.mrb[3].mxu0  ;;  %v912_v45 = vpop.f32.mrb[3].mxu1  ;;  %v1082_v49 = vmax.f32 %v794_v33, 0.0  ;;  %v3855_v34 = vld [vmem:[#allocation8 + $0x5c] ss:$20 sps:$4 sm:$0xff]  }
 0x196   : > { %v1085_v46 = vmax.f32 %v909_v38, 0.0  ;;  %v800_v47 = vadd.f32 %v799_v44, %v4505_v29  ;;  %v913_v48 = vadd.f32 %v912_v45, %v4510_v30  ;;  %v1083_v52 = vmax.f32 %v796_v37, 0.0  ;;  %v3850_v44 = vld [vmem:[#allocation8 + $0x50] ss:$20 sps:$4 sm:$0xff]   ;;  %v3853_v45 = vld [vmem:[#allocation8 + $0x58] ss:$20 sps:$4 sm:$0xff]  }
 0x197   : > { %v1086_v50 = vmax.f32 %v798_v42, 0.0  ;;  %v1088_v51 = vmax.f32 %v911_v43, 0.0 }
 0x198   : > { %v1087_v53 = vmax.f32 %v800_v47, 0.0  ;;  %v1089_v54 = vmax.f32 %v913_v48, 0.0 }
 0x199   : > { %v1146_v55 = vpack.c.bf16 %v1086_v50, %v1082_v49  ;;  %v1148_v56 = vpack.c.bf16 %v1088_v51, %v1084_v41  ;;  %v3858_v50 = vld [vmem:[#allocation8 + $0x7c] ss:$20 sps:$4 sm:$0xff]   ;;  %v3861_v51 = vld [vmem:[#allocation8 + $0x84] ss:$20 sps:$4 sm:$0xff]  }
 0x19a   : > { %v1147_v57 = vpack.c.bf16 %v1087_v53, %v1083_v52  ;;  %v1149_v58 = vpack.c.bf16 %v1089_v54, %v1085_v46  ;;  %v803_v59 = vpop.f32.mrb[4].mxu0  ;;  %v916_v60 = vpop.f32.mrb[4].mxu1 }
 0x19b   : > { %v804_v63 = vadd.f32 %v803_v59, %v4495_v27  ;;  %v917_v1 = vadd.f32 %v916_v60, %v4500_v28  ;;  %v805_v2 = vpop.f32.mrb[5].mxu0  ;;  %v918_v3 = vpop.f32.mrb[5].mxu1 }
 0x19c   : > { %v806_v6 = vadd.f32 %v805_v2, %v4505_v29  ;;  %v919_v7 = vadd.f32 %v918_v3, %v4510_v30  ;;  %v807_v8 = vpop.f32.mrb[6].mxu0  ;;  %v920_v9 = vpop.f32.mrb[6].mxu1  ;;  %1466 = vmatprep.mubr.bf16.mxu1 %v1147_v57  ;;  %1563 = vmatprep.mubr.bf16.mxu0 %v1149_v58  ;;  %v3859_v2 = vld [vmem:[#allocation8 + $0x80] ss:$20 sps:$4 sm:$0xff]   ;;  %v3864_v3 = vld [vmem:[#allocation8 + $0xa4] ss:$20 sps:$4 sm:$0xff]  }
 0x19d   : > { %v1092_v10 = vmax.f32 %v917_v1, 0.0  ;;  %v808_v11 = vadd.f32 %v807_v8, %v4495_v27  ;;  %v921_v12 = vadd.f32 %v920_v9, %v4500_v28  ;;  %v809_v13 = vpop.f32.mrb[7].mxu0  ;;  %v922_v14 = vpop.f32.mrb[7].mxu1  ;;  %1467 = vmatmul.mubr.bf16.vlgmr.msra.gmra.mrb[32].mxu1 %v1146_v55  ;;  %1564 = vmatmul.mubr.bf16.vlgmr.msra.gmra.mrb[48].mxu0 %v1148_v56  ;;  %v1090_v31 = vmax.f32 %v804_v63, 0.0 }
 0x19e   : > { %v1093_v16 = vmax.f32 %v919_v7, 0.0  ;;  %v810_v17 = vadd.f32 %v809_v13, %v4505_v29  ;;  %v923_v18 = vadd.f32 %v922_v14, %v4510_v30  ;;  %1943 = vmatpush1.bf16.msra.mxu1 %v3838_v61  ;;  %2056 = vmatpush1.bf16.msra.mxu0 %v3841_v62  ;;  %v1091_v35 = vmax.f32 %v806_v6, 0.0  ;;  %v3856_v61 = vld [vmem:[#allocation8 + $0x78] ss:$20 sps:$4 sm:$0xff]  }
 0x19f   : > { %v1094_v32 = vmax.f32 %v808_v11, 0.0  ;;  %v1096_v33 = vmax.f32 %v921_v12, 0.0  ;;  %1944 = vmatprep.subr.bf16.mxu1 %v3846_v4  ;;  %2057 = vmatprep.subr.bf16.mxu0 %v3849_v5  ;;  %v3867_v7 = vld [vmem:[#allocation8 + $0xac] ss:$20 sps:$4 sm:$0xff]  }
 0x1a0   : > { %v1095_v36 = vmax.f32 %v810_v17, 0.0  ;;  %v1097_v37 = vmax.f32 %v923_v18, 0.0  ;;  %v3862_v17 = vld [vmem:[#allocation8 + $0xa0] ss:$20 sps:$4 sm:$0xff]   ;;  %v3865_v18 = vld [vmem:[#allocation8 + $0xa8] ss:$20 sps:$4 sm:$0xff]  }
 0x1a1   : > { %v1150_v38 = vpack.c.bf16 %v1094_v32, %v1090_v31  ;;  %v1152_v39 = vpack.c.bf16 %v1096_v33, %v1092_v10  ;;  %v3870_v33 = vld [vmem:[#allocation8 + $0xcc] ss:$20 sps:$4 sm:$0xff]  }
 0x1a2   : > { %v1151_v40 = vpack.c.bf16 %v1095_v36, %v1091_v35  ;;  %v1153_v41 = vpack.c.bf16 %v1097_v37, %v1093_v16  ;;  %v813_v42 = vpop.f32.mrb[8].mxu0  ;;  %v926_v43 = vpop.f32.mrb[8].mxu1  ;;  %1945 = vmatpush1.bf16.msra.mxu1 %v3844_v15  ;;  %2058 = vmatpush1.bf16.msra.mxu0 %v3847_v19 }
 0x1a3   : > { %v814_v46 = vadd.f32 %v813_v42, %v4495_v27  ;;  %v927_v47 = vadd.f32 %v926_v43, %v4500_v28  ;;  %v815_v48 = vpop.f32.mrb[9].mxu0  ;;  %v928_v49 = vpop.f32.mrb[9].mxu1  ;;  %1946 = vmatprep.subr.bf16.mxu1 %v3852_v20  ;;  %2059 = vmatprep.subr.bf16.mxu0 %v3855_v34  ;;  %v3873_v34 = vld [vmem:[#allocation8 + $0xd4] ss:$20 sps:$4 sm:$0xff]  }
 0x1a4   : > { %v816_v52 = vadd.f32 %v815_v48, %v4505_v29  ;;  %v929_v53 = vadd.f32 %v928_v49, %v4510_v30  ;;  %v817_v54 = vpop.f32.mrb[10].mxu0  ;;  %v930_v55 = vpop.f32.mrb[10].mxu1  ;;  %1474 = vmatprep.mubr.bf16.mxu1 %v1151_v40  ;;  %1571 = vmatprep.mubr.bf16.mxu0 %v1153_v41  ;;  %v3871_v48 = vld [vmem:[#allocation8 + $0xd0] ss:$20 sps:$4 sm:$0xff]   ;;  %v3876_v49 = vld [vmem:[#allocation8 + $0xf4] ss:$20 sps:$4 sm:$0xff]  }
 0x1a5   : > { %v1100_v56 = vmax.f32 %v927_v47, 0.0  ;;  %v818_v57 = vadd.f32 %v817_v54, %v4495_v27  ;;  %v931_v58 = vadd.f32 %v930_v55, %v4500_v28  ;;  %v819_v59 = vpop.f32.mrb[11].mxu0  ;;  %v932_v60 = vpop.f32.mrb[11].mxu1  ;;  %1475 = vmatmul.mubr.bf16.gmra.mrb[36].mxu1 %v1150_v38  ;;  %1572 = vmatmul.mubr.bf16.gmra.mrb[52].mxu0 %v1152_v39  ;;  %v1098_v4 = vmax.f32 %v814_v46, 0.0 }
 0x1a6   : > { %v1101_v62 = vmax.f32 %v929_v53, 0.0  ;;  %v820_v63 = vadd.f32 %v819_v59, %v4505_v29  ;;  %v933_v1 = vadd.f32 %v932_v60, %v4510_v30  ;;  %1947 = vmatpush1.bf16.msra.mxu1 %v3850_v44  ;;  %2060 = vmatpush1.bf16.msra.mxu0 %v3853_v45  ;;  %v1099_v8 = vmax.f32 %v816_v52, 0.0  ;;  %v3868_v44 = vld [vmem:[#allocation8 + $0xc8] ss:$20 sps:$4 sm:$0xff]  }
 0x1a7   : > { %v1102_v5 = vmax.f32 %v818_v57, 0.0  ;;  %v1104_v6 = vmax.f32 %v931_v58, 0.0  ;;  %1948 = vmatprep.subr.bf16.mxu1 %v3858_v50  ;;  %2061 = vmatprep.subr.bf16.mxu0 %v3861_v51  ;;  %v3879_v53 = vld [vmem:[#allocation8 + $0xfc] ss:$20 sps:$4 sm:$0xff]  }
 0x1a8   : > { %v1103_v9 = vmax.f32 %v820_v63, 0.0  ;;  %v1105_v10 = vmax.f32 %v933_v1, 0.0  ;;  %v3874_v63 = vld [vmem:[#allocation8 + $0xf0] ss:$20 sps:$4 sm:$0xff]   ;;  %v3877_v1 = vld [vmem:[#allocation8 + $0xf8] ss:$20 sps:$4 sm:$0xff]  }
 0x1a9   : > { %v1154_v11 = vpack.c.bf16 %v1102_v5, %v1098_v4  ;;  %v1156_v12 = vpack.c.bf16 %v1104_v6, %v1100_v56 }
 0x1aa   : > { %v1155_v13 = vpack.c.bf16 %v1103_v9, %v1099_v8  ;;  %v1157_v14 = vpack.c.bf16 %v1105_v10, %v1101_v62  ;;  %v823_v15 = vpop.f32.mrb[12].mxu0  ;;  %v936_v16 = vpop.f32.mrb[12].mxu1  ;;  %1949 = vmatpush1.bf16.msra.mxu1 %v3856_v61  ;;  %2062 = vmatpush1.bf16.msra.mxu0 %v3859_v2 }
 0x1ab   : > { %v824_v19 = vadd.f32 %v823_v15, %v4495_v27  ;;  %v937_v20 = vadd.f32 %v936_v16, %v4500_v28  ;;  %v825_v31 = vpop.f32.mrb[13].mxu0  ;;  %v938_v32 = vpop.f32.mrb[13].mxu1  ;;  %1950 = vmatprep.subr.bf16.mxu1 %v3864_v3  ;;  %2063 = vmatprep.subr.bf16.mxu0 %v3867_v7 }
 0x1ac   : > { %v826_v35 = vadd.f32 %v825_v31, %v4505_v29  ;;  %v939_v36 = vadd.f32 %v938_v32, %v4510_v30  ;;  %v827_v37 = vpop.f32.mrb[14].mxu0  ;;  %v940_v38 = vpop.f32.mrb[14].mxu1  ;;  %1482 = vmatprep.mubr.bf16.mxu1 %v1155_v13  ;;  %1579 = vmatprep.mubr.bf16.mxu0 %v1157_v14 }
 0x1ad   : > { %v1108_v39 = vmax.f32 %v937_v20, 0.0  ;;  %v828_v40 = vadd.f32 %v827_v37, %v4495_v27  ;;  %v941_v41 = vadd.f32 %v940_v38, %v4500_v28  ;;  %v829_v42 = vpop.f32.mrb[15].mxu0  ;;  %v942_v43 = vpop.f32.mrb[15].mxu1  ;;  %1483 = vmatmul.mubr.bf16.gmra.mrb[40].mxu1 %v1154_v11  ;;  %1580 = vmatmul.mubr.bf16.gmra.mrb[56].mxu0 %v1156_v12  ;;  %v1106_v50 = vmax.f32 %v824_v19, 0.0 }
 0x1ae   : > { %v1109_v45 = vmax.f32 %v939_v36, 0.0  ;;  %v830_v46 = vadd.f32 %v829_v42, %v4505_v29  ;;  %v943_v47 = vadd.f32 %v942_v43, %v4510_v30  ;;  %1951 = vmatpush1.bf16.msra.mxu1 %v3862_v17  ;;  %2064 = vmatpush1.bf16.msra.mxu0 %v3865_v18  ;;  %v1107_v54 = vmax.f32 %v826_v35, 0.0 }
 0x1af   : > { %v1110_v51 = vmax.f32 %v828_v40, 0.0  ;;  %v1112_v52 = vmax.f32 %v941_v41, 0.0  ;;  %1952 = vmatprep.subr.bf16.mxu1 %v3870_v33  ;;  %2065 = vmatprep.subr.bf16.mxu0 %v3873_v34 }
 0x1b0   : > { %v1111_v55 = vmax.f32 %v830_v46, 0.0  ;;  %v1113_v56 = vmax.f32 %v943_v47, 0.0 }
 0x1b1   : > { %v1158_v57 = vpack.c.bf16 %v1110_v51, %v1106_v50  ;;  %v1160_v58 = vpack.c.bf16 %v1112_v52, %v1108_v39 }
 0x1b2   : > { %v1159_v59 = vpack.c.bf16 %v1111_v55, %v1107_v54  ;;  %v1161_v60 = vpack.c.bf16 %v1113_v56, %v1109_v45  ;;  %v833_v61 = vpop.f32.mrb[16].mxu0  ;;  %v946_v62 = vpop.f32.mrb[16].mxu1  ;;  %1953 = vmatpush1.bf16.msra.mxu1 %v3868_v44  ;;  %2066 = vmatpush1.bf16.msra.mxu0 %v3871_v48 }
 0x1b3   : > { %v834_v2 = vadd.f32 %v833_v61, %v4495_v27  ;;  %v947_v3 = vadd.f32 %v946_v62, %v4500_v28  ;;  %v835_v4 = vpop.f32.mrb[17].mxu0  ;;  %v948_v5 = vpop.f32.mrb[17].mxu1  ;;  %1954 = vmatprep.subr.bf16.mxu1 %v3876_v49  ;;  %2067 = vmatprep.subr.bf16.mxu0 %v3879_v53 }
 0x1b4   : > { %v836_v6 = vadd.f32 %v835_v4, %v4505_v29  ;;  %v949_v7 = vadd.f32 %v948_v5, %v4510_v30  ;;  %v837_v8 = vpop.f32.mrb[18].mxu0  ;;  %v950_v9 = vpop.f32.mrb[18].mxu1  ;;  %1490 = vmatprep.mubr.bf16.mxu1 %v1159_v59  ;;  %1587 = vmatprep.mubr.bf16.mxu0 %v1161_v60 }
 0x1b5   : > { %v1116_v10 = vmax.f32 %v947_v3, 0.0  ;;  %v838_v11 = vadd.f32 %v837_v8, %v4495_v27  ;;  %v951_v12 = vadd.f32 %v950_v9, %v4500_v28  ;;  %v839_v13 = vpop.f32.mrb[19].mxu0  ;;  %v952_v14 = vpop.f32.mrb[19].mxu1  ;;  %1491 = vmatmul.mubr.bf16.gmra.mrb[44].mxu1 %v1158_v57  ;;  %1588 = vmatmul.mubr.bf16.gmra.mrb[60].mxu0 %v1160_v58  ;;  %v1114_v18 = vmax.f32 %v834_v2, 0.0 }
 0x1b6   : > { %v1117_v15 = vmax.f32 %v949_v7, 0.0  ;;  %v840_v16 = vadd.f32 %v839_v13, %v4505_v29  ;;  %v953_v17 = vadd.f32 %v952_v14, %v4510_v30  ;;  %1955 = vmatpush1.bf16.msra.mxu1 %v3874_v63  ;;  %2068 = vmatpush1.bf16.msra.mxu0 %v3877_v1  ;;  %v1115_v31 = vmax.f32 %v836_v6, 0.0 }
 0x1b7   : > { %v1118_v19 = vmax.f32 %v838_v11, 0.0  ;;  %v1120_v20 = vmax.f32 %v951_v12, 0.0 }
 0x1b8   : > { %v1119_v32 = vmax.f32 %v840_v16, 0.0  ;;  %v1121_v33 = vmax.f32 %v953_v17, 0.0 }
 0x1b9   : > { %v1162_v34 = vpack.c.bf16 %v1118_v19, %v1114_v18  ;;  %v1164_v35 = vpack.c.bf16 %v1120_v20, %v1116_v10 }
 0x1ba   : > { %v1163_v36 = vpack.c.bf16 %v1119_v32, %v1115_v31  ;;  %v1165_v37 = vpack.c.bf16 %v1121_v33, %v1117_v15  ;;  %v843_v38 = vpop.f32.mrb[20].mxu0  ;;  %v956_v39 = vpop.f32.mrb[20].mxu1 }
 0x1bb   : > { %v844_v40 = vadd.f32 %v843_v38, %v4495_v27  ;;  %v957_v41 = vadd.f32 %v956_v39, %v4500_v28  ;;  %v845_v42 = vpop.f32.mrb[21].mxu0  ;;  %v958_v43 = vpop.f32.mrb[21].mxu1 }
 0x1bc   : > { %v846_v44 = vadd.f32 %v845_v42, %v4505_v29  ;;  %v959_v45 = vadd.f32 %v958_v43, %v4510_v30  ;;  %v847_v46 = vpop.f32.mrb[22].mxu0  ;;  %v960_v47 = vpop.f32.mrb[22].mxu1  ;;  %1498 = vmatprep.mubr.bf16.mxu1 %v1163_v36  ;;  %1595 = vmatprep.mubr.bf16.mxu0 %v1165_v37 }
 0x1bd   : > { %v1124_v48 = vmax.f32 %v957_v41, 0.0  ;;  %v848_v49 = vadd.f32 %v847_v46, %v4495_v27  ;;  %v961_v50 = vadd.f32 %v960_v47, %v4500_v28  ;;  %v849_v51 = vpop.f32.mrb[23].mxu0  ;;  %v962_v52 = vpop.f32.mrb[23].mxu1  ;;  %1499 = vmatmul.mubr.bf16.gmra.mrb[48].mxu1 %v1162_v34  ;;  %1596 = vmatmul.mubr.bf16.gmra.mrb[64].mxu0 %v1164_v35  ;;  %v1122_v56 = vmax.f32 %v844_v40, 0.0 }
 0x1be   : > { %v1125_v53 = vmax.f32 %v959_v45, 0.0  ;;  %v850_v54 = vadd.f32 %v849_v51, %v4505_v29  ;;  %v963_v55 = vadd.f32 %v962_v52, %v4510_v30  ;;  %v1123_v59 = vmax.f32 %v846_v44, 0.0 }
 0x1bf   : > { %v1126_v57 = vmax.f32 %v848_v49, 0.0  ;;  %v1128_v58 = vmax.f32 %v961_v50, 0.0 }
 0x1c0   : > { %v1127_v60 = vmax.f32 %v850_v54, 0.0  ;;  %v1129_v61 = vmax.f32 %v963_v55, 0.0 }
 0x1c1   : > { %v1166_v62 = vpack.c.bf16 %v1126_v57, %v1122_v56  ;;  %v1168_v63 = vpack.c.bf16 %v1128_v58, %v1124_v48 }
 0x1c2   : > { %v1167_v1 = vpack.c.bf16 %v1127_v60, %v1123_v59  ;;  %v1169_v2 = vpack.c.bf16 %v1129_v61, %v1125_v53  ;;  %v853_v3 = vpop.f32.mrb[24].mxu0  ;;  %v966_v4 = vpop.f32.mrb[24].mxu1 }
 0x1c3   : > { %v854_v5 = vadd.f32 %v853_v3, %v4495_v27  ;;  %v967_v6 = vadd.f32 %v966_v4, %v4500_v28  ;;  %v855_v7 = vpop.f32.mrb[25].mxu0  ;;  %v968_v8 = vpop.f32.mrb[25].mxu1 }
 0x1c4   : > { %v856_v9 = vadd.f32 %v855_v7, %v4505_v29  ;;  %v969_v10 = vadd.f32 %v968_v8, %v4510_v30  ;;  %v857_v11 = vpop.f32.mrb[26].mxu0  ;;  %v970_v12 = vpop.f32.mrb[26].mxu1  ;;  %1506 = vmatprep.mubr.bf16.mxu1 %v1167_v1  ;;  %1603 = vmatprep.mubr.bf16.mxu0 %v1169_v2 }
 0x1c5   : > { %v1132_v13 = vmax.f32 %v967_v6, 0.0  ;;  %v858_v14 = vadd.f32 %v857_v11, %v4495_v27  ;;  %v971_v15 = vadd.f32 %v970_v12, %v4500_v28  ;;  %v859_v16 = vpop.f32.mrb[27].mxu0  ;;  %v972_v17 = vpop.f32.mrb[27].mxu1  ;;  %1507 = vmatmul.mubr.bf16.gmra.mrb[52].mxu1 %v1166_v62  ;;  %1604 = vmatmul.mubr.bf16.gmra.mrb[68].mxu0 %v1168_v63  ;;  %v1130_v31 = vmax.f32 %v854_v5, 0.0 }
 0x1c6   : > { %v1133_v18 = vmax.f32 %v969_v10, 0.0  ;;  %v860_v19 = vadd.f32 %v859_v16, %v4505_v29  ;;  %v973_v20 = vadd.f32 %v972_v17, %v4510_v30  ;;  %v1131_v34 = vmax.f32 %v856_v9, 0.0 }
 0x1c7   : > { %v1134_v32 = vmax.f32 %v858_v14, 0.0  ;;  %v1136_v33 = vmax.f32 %v971_v15, 0.0 }
 0x1c8   : > { %v1135_v35 = vmax.f32 %v860_v19, 0.0  ;;  %v1137_v36 = vmax.f32 %v973_v20, 0.0  ;;  %v3885_v19 = vld [vmem:[#allocation8 + $0x124] ss:$20 sps:$4 sm:$0xff]  }
 0x1c9   : > { %v1170_v37 = vpack.c.bf16 %v1134_v32, %v1130_v31  ;;  %v1172_v38 = vpack.c.bf16 %v1136_v33, %v1132_v13  ;;  %v3880_v20 = vld [vmem:[#allocation8 + $0x118] ss:$20 sps:$4 sm:$0xff]   ;;  %v3883_v31 = vld [vmem:[#allocation8 + $0x120] ss:$20 sps:$4 sm:$0xff]   ;;  %2069 = vmatprep.subr.bf16.mxu0 %v3885_v19  ;;  %v3886_v32 = vld [vmem:[#allocation8 + $0x10] ss:$20 sps:$4 sm:$0xff]  }
 0x1ca   : > { %v1171_v39 = vpack.c.bf16 %v1135_v35, %v1131_v34  ;;  %v1173_v40 = vpack.c.bf16 %v1137_v36, %v1133_v18  ;;  %v863_v41 = vpop.f32.mrb[28].mxu0  ;;  %v976_v42 = vpop.f32.mrb[28].mxu1  ;;  %v3882_v18 = vld [vmem:[#allocation8 + $0x11c] ss:$20 sps:$4 sm:$0xff]   ;;  %2070 = vmatpush1.bf16.msra.mxu0 %v3883_v31  ;;  %v3894_v33 = vld [vmem:[#allocation10 + $0x40] sm:$0xff]   ;;  %v496_v34 = vsub.s32 4, %v4481_v21 }
 0x1cb   : > { %v864_v43 = vadd.f32 %v863_v41, %v4495_v27  ;;  %v977_v44 = vadd.f32 %v976_v42, %v4500_v28  ;;  %v865_v45 = vpop.f32.mrb[29].mxu0  ;;  %v978_v46 = vpop.f32.mrb[29].mxu1  ;;  %1956 = vmatprep.subr.bf16.mxu1 %v3882_v18  ;;  %3456 = vmatprep.subr.bf16.mxu0 %v3894_v33  ;;  %v3887_v19 = vld [vmem:[#allocation8 + $0x38] ss:$20 sps:$4 sm:$0xff]  }
 0x1cc   : > { %v866_v47 = vadd.f32 %v865_v45, %v4505_v29  ;;  %v979_v48 = vadd.f32 %v978_v46, %v4510_v30  ;;  %v867_v49 = vpop.f32.mrb[30].mxu0  ;;  %v980_v50 = vpop.f32.mrb[30].mxu1  ;;  %1514 = vmatprep.mubr.bf16.mxu1 %v1171_v39  ;;  %1611 = vmatprep.mubr.bf16.mxu0 %v1173_v40  ;;  %v4606_v35 = vrot.slane %v4488_v24, %v496_v34 }
 0x1cd   : > { %v1140_v51 = vmax.f32 %v977_v44, 0.0  ;;  %v868_v52 = vadd.f32 %v867_v49, %v4495_v27  ;;  %v981_v53 = vadd.f32 %v980_v50, %v4500_v28  ;;  %v869_v54 = vpop.f32.mrb[31].mxu0  ;;  %v982_v55 = vpop.f32.mrb[31].mxu1  ;;  %1515 = vmatmul.mubr.bf16.gmra.mrb[56].mxu1 %v1170_v37  ;;  %1612 = vmatmul.mubr.bf16.gmra.mrb[72].mxu0 %v1172_v38  ;;  %v1138_v59 = vmax.f32 %v864_v43, 0.0 }
 0x1ce   : > { %v1141_v56 = vmax.f32 %v979_v48, 0.0  ;;  %v870_v57 = vadd.f32 %v869_v54, %v4505_v29  ;;  %v983_v58 = vadd.f32 %v982_v55, %v4510_v30  ;;  %v1139_v62 = vmax.f32 %v866_v47, 0.0  ;;  %1957 = vmatpush1.bf16.msra.mxu1 %v3880_v20  ;;  %v3896_v20 = vld [vmem:[#allocation10 + $0x48] sm:$0xff]  }
 0x1cf   : > { %v1142_v60 = vmax.f32 %v868_v52, 0.0  ;;  %v1144_v61 = vmax.f32 %v981_v53, 0.0  ;;  %3616 = vmatprep.subr.bf16.mxu1 %v3886_v32  ;;  %v4613_v52 = vld [vmem:[%s4927_s4] ss:$0 sm:$0xff] }
 0x1d0   : > { %v1143_v63 = vmax.f32 %v870_v57, 0.0  ;;  %v1145_v1 = vmax.f32 %v983_v58, 0.0 }
 0x1d1   : > { %v1174_v2 = vpack.c.bf16 %v1142_v60, %v1138_v59  ;;  %v1176_v3 = vpack.c.bf16 %v1144_v61, %v1140_v51 }
 0x1d2   : > { %v1175_v27 = vpack.c.bf16 %v1143_v63, %v1139_v62  ;;  %v1177_v4 = vpack.c.bf16 %v1145_v1, %v1141_v56  ;;  %v3602_v28 = vpop.f32.mrb[32].mxu0 }
 0x1d3   : > { %v1019_v5 = vpop.f32.mrb[33].mxu0  ;;  %v1028_v56 = vadd.f32 %v3602_v28, %v4606_v35  ;;  %v3895_v28 = vld [vmem:[#allocation10] sm:$0xff]  }
 0x1d4   : > { %1522 = vmatprep.mubr.bf16.mxu1 %v1175_v27  ;;  %1619 = vmatprep.mubr.bf16.mxu0 %v1177_v4  ;;  %v3603_v6 = vpop.f32.mrb[34].mxu0  ;;  %v1020_v40 = vadd.f32 %v1019_v5, %v4606_v35 }
 0x1d5   : > { %1523 = vmatmul.mubr.bf16.gmra.mrb[60].mxu1 %v1174_v2  ;;  %1620 = vmatmul.mubr.bf16.gmra.mrb[76].mxu0 %v1176_v3  ;;  %v1022_v29 = vpop.f32.mrb[35].mxu0  ;;  %v1031_v2 = vadd.f32 %v3603_v6, %v4606_v35 }
 0x1d6   : > { %1974 = vmatprep.mubr.bf16.mxu1 %v4153_v0  ;;  %2087 = vmatprep.mubr.bf16.mxu0 %v4153_v0  ;;  %v1023_v47 = vadd.f32 %v1022_v29, %v4606_v35 }
 0x1da   : > { %v4578_v30 = vpop.f32.mrb[36].mxu0 }
 0x1db   : > { %v4580_v7 = vpop.f32.mrb[37].mxu0 }
 0x1dc   : > { %v4582_v8 = vpop.f32.mrb[38].mxu0 }
 0x1dd   : > { %v4584_v9 = vpop.f32.mrb[39].mxu0 }
 0x1e2   : > { %v4586_v10 = vpop.f32.mrb[40].mxu0 }
 0x1e3   : > { %v4588_v11 = vpop.f32.mrb[41].mxu0 }
 0x1e4   : > { %v4590_v12 = vpop.f32.mrb[42].mxu0 }
 0x1e5   : > { %v4592_v13 = vpop.f32.mrb[43].mxu0 }
 0x1ea   : > { %v4594_v14 = vpop.f32.mrb[44].mxu0 }
 0x1eb   : > { %v4596_v15 = vpop.f32.mrb[45].mxu0 }
 0x1ec   : > { %v4598_v16 = vpop.f32.mrb[46].mxu0 }
 0x1ed   : > { %v4600_v17 = vpop.f32.mrb[47].mxu0 }
 0x270   : > { %v3328_v36 = vpop.f32.mrb[32].mxu1  ;;  %v3392_v37 = vpop.f32.mrb[48].mxu0 }
 0x271   : > { %v3329_v38 = vpop.f32.mrb[33].mxu1  ;;  %v3393_v39 = vpop.f32.mrb[49].mxu0 }
 0x272   : > { %v3330_v41 = vadd.f32 %v3329_v38, %v3328_v36  ;;  %v3394_v42 = vadd.f32 %v3393_v39, %v3392_v37  ;;  %v3331_v43 = vpop.f32.mrb[34].mxu1  ;;  %v3395_v44 = vpop.f32.mrb[50].mxu0  ;;  %v1036_v38 = vadd.f32 %v4580_v7, %v4606_v35 }
 0x273   : > { %v3332_v45 = vpop.f32.mrb[35].mxu1  ;;  %v3396_v46 = vpop.f32.mrb[51].mxu0 }
 0x274   : > { %v1469_v48 = vadd.f32 %v3330_v41, %v1020_v40  ;;  %v3333_v49 = vadd.f32 %v3332_v45, %v3331_v43  ;;  %v3397_v50 = vadd.f32 %v3396_v46, %v3395_v44  ;;  %v3888_v41 = vld [vmem:[#allocation8 + $0x60] ss:$20 sps:$4 sm:$0xff]  }
 0x276   : > { %v1566_v51 = vadd.f32 %v3394_v42, %v1469_v48  ;;  %v1472_v24 = vadd.f32 %v3333_v49, %v1023_v47  ;;  %v3897_v42 = vld [vmem:[#allocation10 + $0x8] sm:$0xff]  }
 0x278   : > { %v1569_v53 = vadd.f32 %v3397_v50, %v1472_v24  ;;  %v3334_v54 = vpop.f32.mrb[36].mxu1  ;;  %v3398_v55 = vpop.f32.mrb[52].mxu0  ;;  %v1635_v59 = vadd.f32 %v4613_v52, %v1566_v51 }
 0x279   : > { %v3335_v57 = vpop.f32.mrb[37].mxu1  ;;  %v3399_v58 = vpop.f32.mrb[53].mxu0 }
 0x27a   : > { %v1636_v60 = vadd.f32 %v4613_v52, %v1569_v53  ;;  %v3336_v61 = vadd.f32 %v3335_v57, %v3334_v54  ;;  %v3400_v62 = vadd.f32 %v3399_v58, %v3398_v55  ;;  %v3337_v63 = vpop.f32.mrb[38].mxu1  ;;  %v3401_v1 = vpop.f32.mrb[54].mxu0  ;;  %v3898_v54 = vld [vmem:[#allocation10 + $0x50] sm:$0xff]   ;;  %v3889_v55 = vld [vmem:[#allocation8 + $0x88] ss:$20 sps:$4 sm:$0xff]  }
 0x27b   : > { %v3338_v3 = vpop.f32.mrb[39].mxu1  ;;  %v3402_v27 = vpop.f32.mrb[55].mxu0 }
 0x27c   : > { %v4619_v4 = vpack.c.bf16 %v1636_v60, %v1635_v59  ;;  %v1477_v5 = vadd.f32 %v3336_v61, %v1028_v56  ;;  %v3339_v29 = vadd.f32 %v3338_v3, %v3337_v63  ;;  %v3403_v18 = vadd.f32 %v3402_v27, %v3401_v1  ;;  %v3899_v56 = vld [vmem:[#allocation10 + $0x10] sm:$0xff]   ;;  %v3901_v3 = vld [vmem:[#allocation10 + $0x18] sm:$0xff]  }
 0x27e   : > { %v1574_v31 = vadd.f32 %v3400_v62, %v1477_v5  ;;  %v1480_v33 = vadd.f32 %v3339_v29, %v1031_v2  ;;  %1975 = vmatmul.mubr.bf16.vlgmr.msra.gmra.mrb[64].mxu1 %v4619_v4  ;;  %2088 = vmatmul.mubr.bf16.vlgmr.msra.gmra.mrb[80].mxu0 %v4619_v4  ;;  %v1044_v62 = vadd.f32 %v4578_v30, %v4606_v35  ;;  %v3890_v2 = vld [vmem:[#allocation8 + $0xb0] ss:$20 sps:$4 sm:$0xff]  }
 0x27f   : > { %1984 = vmatprep.mubr.bf16.mxu1 %v4153_v0  ;;  %2097 = vmatprep.mubr.bf16.mxu0 %v4153_v0 }
 0x280   : > { %v1577_v6 = vadd.f32 %v3403_v18, %v1480_v33  ;;  %v3340_v36 = vpop.f32.mrb[40].mxu1  ;;  %v3404_v37 = vpop.f32.mrb[56].mxu0  ;;  %3617 = vmatpush3.bf16.msra.mxu1 %v3886_v32  ;;  %3457 = vmatpush3.bf16.msra.mxu0 %v3895_v28  ;;  %v1637_v43 = vadd.f32 %v4613_v52, %v1574_v31  ;;  %v1039_v32 = vadd.f32 %v4584_v9, %v4606_v35  ;;  %v3900_v9 = vld [vmem:[#allocation10 + $0x58] sm:$0xff]  }
 0x281   : > { %v3341_v39 = vpop.f32.mrb[41].mxu1  ;;  %v3405_v40 = vpop.f32.mrb[57].mxu0  ;;  %3618 = vmatprep.subr.bf16.mxu1 %v3887_v19  ;;  %3458 = vmatprep.subr.bf16.mxu0 %v3896_v20  ;;  %v1047_v20 = vadd.f32 %v4582_v8, %v4606_v35  ;;  %v3908_v8 = vld [vmem:[#allocation10 + $0x68] sm:$0xff]  }
 0x282   : > { %v1638_v44 = vadd.f32 %v4613_v52, %v1577_v6  ;;  %v3342_v45 = vadd.f32 %v3341_v39, %v3340_v36  ;;  %v3406_v46 = vadd.f32 %v3405_v40, %v3404_v37  ;;  %v3343_v47 = vpop.f32.mrb[42].mxu1  ;;  %v3407_v48 = vpop.f32.mrb[58].mxu0  ;;  %v3891_v39 = vld [vmem:[#allocation8 + $0xd8] ss:$20 sps:$4 sm:$0xff]   ;;  %v3903_v40 = vld [vmem:[#allocation10 + $0x20] sm:$0xff]  }
 0x283   : > { %v3344_v49 = vpop.f32.mrb[43].mxu1  ;;  %v3408_v50 = vpop.f32.mrb[59].mxu0 }
 0x284   : > { %v1485_v7 = vadd.f32 %v3342_v45, %v1036_v38  ;;  %v3345_v51 = vadd.f32 %v3344_v49, %v3343_v47  ;;  %v3409_v24 = vadd.f32 %v3408_v50, %v3407_v48  ;;  %v4631_v53 = vpack.c.bf16 %v1638_v44, %v1637_v43  ;;  %3619 = vmatpush3.bf16.msra.mxu1 %v3887_v19  ;;  %v3902_v38 = vld [vmem:[#allocation10 + $0x60] sm:$0xff]   ;;  %v3909_v49 = vld [vmem:[#allocation10 + $0x28] sm:$0xff]  }
 0x285   : > { %3620 = vmatprep.subr.bf16.mxu1 %v3888_v41  ;;  %3459 = vmatpush3.bf16.msra.mxu0 %v3897_v42 }
 0x286   : > { %v1582_v57 = vadd.f32 %v3406_v46, %v1485_v7  ;;  %v1488_v58 = vadd.f32 %v3345_v51, %v1039_v32  ;;  %1985 = vmatmul.mubr.bf16.gmra.mrb[68].mxu1 %v4631_v53  ;;  %2098 = vmatmul.mubr.bf16.gmra.mrb[84].mxu0 %v4631_v53  ;;  %v1052_v46 = vadd.f32 %v4588_v11, %v4606_v35  ;;  %v3892_v32 = vld [vmem:[#allocation8 + $0x100] ss:$20 sps:$4 sm:$0xff]  }
 0x287   : > { %1994 = vmatprep.mubr.bf16.mxu1 %v4153_v0  ;;  %2107 = vmatprep.mubr.bf16.mxu0 %v4153_v0 }
 0x288   : > { %v1585_v59 = vadd.f32 %v3409_v24, %v1488_v58  ;;  %v3346_v60 = vpop.f32.mrb[44].mxu1  ;;  %v3410_v61 = vpop.f32.mrb[60].mxu0  ;;  %3621 = vmatpush3.bf16.msra.mxu1 %v3888_v41  ;;  %3460 = vmatprep.subr.bf16.mxu0 %v3898_v54  ;;  %v1639_v27 = vadd.f32 %v4613_v52, %v1582_v57 }
 0x289   : > { %v3347_v63 = vpop.f32.mrb[45].mxu1  ;;  %v3411_v1 = vpop.f32.mrb[61].mxu0  ;;  %3622 = vmatprep.subr.bf16.mxu1 %v3889_v55  ;;  %3461 = vmatpush3.bf16.msra.mxu0 %v3899_v56  ;;  %v1055_v56 = vadd.f32 %v4592_v13, %v4606_v35 }
 0x28a   : > { %v1640_v5 = vadd.f32 %v4613_v52, %v1585_v59  ;;  %v3348_v29 = vadd.f32 %v3347_v63, %v3346_v60  ;;  %v3412_v18 = vadd.f32 %v3411_v1, %v3410_v61  ;;  %v3349_v28 = vpop.f32.mrb[46].mxu1  ;;  %v3413_v19 = vpop.f32.mrb[62].mxu0  ;;  %3462 = vmatprep.subr.bf16.mxu0 %v3900_v9  ;;  %v3914_v61 = vld [vmem:[#allocation10 + $0x70] sm:$0xff]  }
 0x28b   : > { %v3350_v31 = vpop.f32.mrb[47].mxu1  ;;  %v3414_v30 = vpop.f32.mrb[63].mxu0  ;;  %v3915_v63 = vld [vmem:[#allocation10 + $0x30] sm:$0xff]  }
 0x28c   : > { %v1493_v33 = vadd.f32 %v3348_v29, %v1044_v62  ;;  %v3351_v6 = vadd.f32 %v3350_v31, %v3349_v28  ;;  %v3415_v36 = vadd.f32 %v3414_v30, %v3413_v19  ;;  %v4643_v37 = vpack.c.bf16 %v1640_v5, %v1639_v27  ;;  %3623 = vmatpush3.bf16.msra.mxu1 %v3889_v55  ;;  %v3893_v62 = vld [vmem:[#allocation8 + $0x128] ss:$20 sps:$4 sm:$0xff]   ;;  %v3904_v28 = vld [vmem:[#allocation10 + $0xc0] sm:$0xff]  }
 0x28d   : > { %3624 = vmatprep.subr.bf16.mxu1 %v3890_v2  ;;  %3463 = vmatpush3.bf16.msra.mxu0 %v3901_v3  ;;  %v1060_v5 = vadd.f32 %v4586_v10, %v4606_v35 }
 0x28e   : > { %v1590_v41 = vadd.f32 %v3412_v18, %v1493_v33  ;;  %v1496_v42 = vadd.f32 %v3351_v6, %v1047_v20  ;;  %1995 = vmatmul.mubr.bf16.gmra.mrb[72].mxu1 %v4643_v37  ;;  %2108 = vmatmul.mubr.bf16.gmra.mrb[88].mxu0 %v4643_v37 }
 0x28f   : > { %2004 = vmatprep.mubr.bf16.mxu1 %v4153_v0  ;;  %2117 = vmatprep.mubr.bf16.mxu0 %v4153_v0 }
 0x290   : > { %v1593_v43 = vadd.f32 %v3415_v36, %v1496_v42  ;;  %v3352_v44 = vpop.f32.mrb[48].mxu1  ;;  %v3416_v45 = vpop.f32.mrb[64].mxu0  ;;  %3625 = vmatpush3.bf16.msra.mxu1 %v3890_v2  ;;  %3464 = vmatprep.subr.bf16.mxu0 %v3902_v38  ;;  %v1641_v50 = vadd.f32 %v4613_v52, %v1590_v41  ;;  %v1063_v36 = vadd.f32 %v4590_v12, %v4606_v35 }
 0x291   : > { %v3353_v47 = vpop.f32.mrb[49].mxu1  ;;  %v3417_v48 = vpop.f32.mrb[65].mxu0  ;;  %3626 = vmatprep.subr.bf16.mxu1 %v3891_v39  ;;  %3465 = vmatpush3.bf16.msra.mxu0 %v3903_v40 }
 0x292   : > { %v1642_v7 = vadd.f32 %v4613_v52, %v1593_v43  ;;  %v3354_v51 = vadd.f32 %v3353_v47, %v3352_v44  ;;  %v3418_v24 = vadd.f32 %v3417_v48, %v3416_v45  ;;  %v3355_v54 = vpop.f32.mrb[50].mxu1  ;;  %v3419_v55 = vpop.f32.mrb[66].mxu0  ;;  %3466 = vmatprep.subr.bf16.mxu0 %v3908_v8 }
 0x293   : > { %v3356_v57 = vpop.f32.mrb[51].mxu1  ;;  %v3420_v11 = vpop.f32.mrb[67].mxu0 }
 0x294   : > { %v1501_v58 = vadd.f32 %v3354_v51, %v1052_v46  ;;  %v3357_v9 = vadd.f32 %v3356_v57, %v3355_v54  ;;  %v3421_v59 = vadd.f32 %v3420_v11, %v3419_v55  ;;  %v4655_v60 = vpack.c.bf16 %v1642_v7, %v1641_v50  ;;  %3627 = vmatpush3.bf16.msra.mxu1 %v3891_v39 }
 0x295   : > { %3628 = vmatprep.subr.bf16.mxu1 %v3892_v32  ;;  %3467 = vmatpush3.bf16.msra.mxu0 %v3909_v49  ;;  %v1068_v46 = vadd.f32 %v4596_v15, %v4606_v35  ;;  %v1071_v54 = vadd.f32 %v4600_v17, %v4606_v35  ;;  %v1076_v17 = vadd.f32 %v4594_v14, %v4606_v35 }
 0x296   : > { %v1598_v1 = vadd.f32 %v3418_v24, %v1501_v58  ;;  %v1504_v2 = vadd.f32 %v3357_v9, %v1055_v56  ;;  %2005 = vmatmul.mubr.bf16.gmra.mrb[76].mxu1 %v4655_v60  ;;  %2118 = vmatmul.mubr.bf16.gmra.mrb[92].mxu0 %v4655_v60 }
 0x297   : > { %2014 = vmatprep.mubr.bf16.mxu1 %v4153_v0  ;;  %2127 = vmatprep.mubr.bf16.mxu0 %v4153_v0 }
 0x298   : > { %v1601_v13 = vadd.f32 %v3421_v59, %v1504_v2  ;;  %v3358_v3 = vpop.f32.mrb[52].mxu1  ;;  %v3422_v27 = vpop.f32.mrb[68].mxu0  ;;  %3629 = vmatpush3.bf16.msra.mxu1 %v3892_v32  ;;  %3468 = vmatprep.subr.bf16.mxu0 %v3914_v61  ;;  %v1643_v19 = vadd.f32 %v4613_v52, %v1598_v1 }
 0x299   : > { %v3359_v29 = vpop.f32.mrb[53].mxu1  ;;  %v3423_v18 = vpop.f32.mrb[69].mxu0  ;;  %3630 = vmatprep.subr.bf16.mxu1 %v3893_v62  ;;  %3469 = vmatpush3.bf16.msra.mxu0 %v3915_v63 }
 0x29a   : > { %v1644_v20 = vadd.f32 %v4613_v52, %v1601_v13  ;;  %v3360_v31 = vadd.f32 %v3359_v29, %v3358_v3  ;;  %v3424_v30 = vadd.f32 %v3423_v18, %v3422_v27  ;;  %v3361_v33 = vpop.f32.mrb[54].mxu1  ;;  %v3425_v6 = vpop.f32.mrb[70].mxu0 }
 0x29b   : > { %v3362_v38 = vpop.f32.mrb[55].mxu1  ;;  %v3426_v39 = vpop.f32.mrb[71].mxu0 }
 0x29c   : > { %v1509_v40 = vadd.f32 %v3360_v31, %v1060_v5  ;;  %v3363_v10 = vadd.f32 %v3362_v38, %v3361_v33  ;;  %v3427_v41 = vadd.f32 %v3426_v39, %v3425_v6  ;;  %v4667_v42 = vpack.c.bf16 %v1644_v20, %v1643_v19  ;;  %3631 = vmatpush3.bf16.msra.mxu1 %v3893_v62 }
 0x29d   : > { %3520 = vmatprep.subr.bf16.mxu1 %v3904_v28  ;;  %v1079_v28 = vadd.f32 %v4598_v16, %v4606_v35  ;;  %v3905_v35 = vld [vmem:[#allocation10 + $0x80] sm:$0xff]  }
 0x29e   : > { %v1606_v8 = vadd.f32 %v3424_v30, %v1509_v40  ;;  %v1512_v43 = vadd.f32 %v3363_v10, %v1063_v36  ;;  %2015 = vmatmul.mubr.bf16.gmra.mrb[80].mxu1 %v4667_v42  ;;  %2128 = vmatmul.mubr.bf16.gmra.mrb[96].mxu0 %v4667_v42  ;;  %v3906_v10 = vld [vmem:[#allocation10 + $0xc8] sm:$0xff]  }
 0x29f   : > { %2024 = vmatprep.mubr.bf16.mxu1 %v4153_v0  ;;  %2137 = vmatprep.mubr.bf16.mxu0 %v4153_v0 }
 0x2a0   : > { %v1609_v12 = vadd.f32 %v3427_v41, %v1512_v43  ;;  %v3364_v44 = vpop.f32.mrb[56].mxu1  ;;  %v3428_v45 = vpop.f32.mrb[72].mxu0  ;;  %v1645_v32 = vadd.f32 %v4613_v52, %v1606_v8  ;;  %v3907_v41 = vld [vmem:[#allocation10 + $0x88] sm:$0xff]   ;;  %v3911_v8 = vld [vmem:[#allocation10 + $0x90] sm:$0xff]   ;;  %v3912_v43 = vld [vmem:[#allocation10 + $0xd8] sm:$0xff]  }
 0x2a1   : > { %v3365_v47 = vpop.f32.mrb[57].mxu1  ;;  %v3429_v48 = vpop.f32.mrb[73].mxu0 }
 0x2a2   : > { %v1646_v49 = vadd.f32 %v4613_v52, %v1609_v12  ;;  %v3366_v50 = vadd.f32 %v3365_v47, %v3364_v44  ;;  %v3430_v7 = vadd.f32 %v3429_v48, %v3428_v45  ;;  %v3367_v51 = vpop.f32.mrb[58].mxu1  ;;  %v3431_v24 = vpop.f32.mrb[74].mxu0  ;;  %v3919_v12 = vld [vmem:[#allocation10 + $0xa8] sm:$0xff]   ;;  %v3922_v44 = vld [vmem:[#allocation10 + $0xf0] sm:$0xff]   ;;  %v3925_v47 = vld [vmem:[#allocation10 + $0xb8] sm:$0xff]  }
 0x2a3   : > { %v3368_v55 = vpop.f32.mrb[59].mxu1  ;;  %v3432_v56 = vpop.f32.mrb[75].mxu0  ;;  %v3923_v45 = vld [vmem:[#allocation10 + $0xb0] sm:$0xff]   ;;  %v4699_v48 = vld [vmem:[%s4929_s6] sm:$0x1f] }
 0x2a4   : > { %v1517_v57 = vadd.f32 %v3366_v50, %v1068_v46  ;;  %v3369_v11 = vadd.f32 %v3368_v55, %v3367_v51  ;;  %v3433_v58 = vadd.f32 %v3432_v56, %v3431_v24  ;;  %v1656_v9 = vpack.c.bf16 %v1646_v49, %v1645_v32  ;;  %v3921_v46 = vld [vmem:[#allocation10 + $0x38] sm:$0xff]  }
 0x2a5   : > { %v4704_v32 = vrot.slane %v4699_v48, %v480_v22  ;;  %v4709_v49 = vrot.slane %v4699_v48, %v488_v23  ;;  %v4714_v50 = vrot.slane %v4699_v48, %v484_v25 }
 0x2a6   : > { %v1614_v15 = vadd.f32 %v3430_v7, %v1517_v57  ;;  %v1520_v59 = vadd.f32 %v3369_v11, %v1071_v54  ;;  %2025 = vmatmul.mubr.bf16.gmra.mrb[84].mxu1 %v1656_v9  ;;  %2138 = vmatmul.mubr.bf16.gmra.mrb[100].mxu0 %v1656_v9  ;;  %v4719_v7 = vrot.slane %v4699_v48, %v492_v26 }
 0x2a7   : > { %2034 = vmatprep.mubr.bf16.mxu1 %v4153_v0  ;;  %2147 = vmatprep.mubr.bf16.mxu0 %v4153_v0 }
 0x2a8   : > { %v1617_v61 = vadd.f32 %v3433_v58, %v1520_v59  ;;  %v3370_v62 = vpop.f32.mrb[60].mxu1  ;;  %v3434_v63 = vpop.f32.mrb[76].mxu0  ;;  %v1647_v13 = vadd.f32 %v4613_v52, %v1614_v15 }
 0x2a9   : > { %v3371_v1 = vpop.f32.mrb[61].mxu1  ;;  %v3435_v2 = vpop.f32.mrb[77].mxu0 }
 0x2aa   : > { %v1648_v3 = vadd.f32 %v4613_v52, %v1617_v61  ;;  %v3372_v27 = vadd.f32 %v3371_v1, %v3370_v62  ;;  %v3436_v5 = vadd.f32 %v3435_v2, %v3434_v63  ;;  %v3373_v29 = vpop.f32.mrb[62].mxu1  ;;  %v3437_v18 = vpop.f32.mrb[78].mxu0 }
 0x2ab   : > { %v3374_v19 = vpop.f32.mrb[63].mxu1  ;;  %v3438_v20 = vpop.f32.mrb[79].mxu0 }
 0x2ac   : > { %v1525_v31 = vadd.f32 %v3372_v27, %v1076_v17  ;;  %v3375_v30 = vadd.f32 %v3374_v19, %v3373_v29  ;;  %v3439_v33 = vadd.f32 %v3438_v20, %v3437_v18  ;;  %v1657_v6 = vpack.c.bf16 %v1648_v3, %v1647_v13 }
 0x2ae   : > { %v1622_v14 = vadd.f32 %v3436_v5, %v1525_v31  ;;  %v1528_v36 = vadd.f32 %v3375_v30, %v1079_v28  ;;  %2035 = vmatmul.mubr.bf16.gmra.mrb[88].mxu1 %v1657_v6  ;;  %2148 = vmatmul.mubr.bf16.gmra.mrb[104].mxu0 %v1657_v6 }
 0x2af   : > { %2044 = vmatprep.mubr.bf16.mxu1 %v4153_v0  ;;  %2157 = vmatprep.mubr.bf16.mxu0 %v4153_v0  ;;  %v3910_v0 = vld [vmem:[#allocation10 + $0xd0] sm:$0xff]  }
 0x2b0   : > { %v1625_v38 = vadd.f32 %v3439_v33, %v1528_v36  ;;  %v1649_v39 = vadd.f32 %v4613_v52, %v1622_v14 }
 0x2b2   : > { %v1650_v40 = vadd.f32 %v4613_v52, %v1625_v38  ;;  %v3913_v52 = vld [vmem:[#allocation10 + $0x98] sm:$0xff]  }
 0x2b4   : > { %v1658_v16 = vpack.c.bf16 %v1650_v40, %v1649_v39 }
 0x2b6   : > { %2045 = vmatmul.mubr.bf16.gmra.mrb[92].mxu1 %v1658_v16  ;;  %2158 = vmatmul.mubr.bf16.gmra.mrb[108].mxu0 %v1658_v16 }
 0x2b7   : > { %3632 = vmatprep.mubr.bf16.mxu1 %v4619_v4  ;;  %v3916_v4 = vld [vmem:[#allocation10 + $0xe0] sm:$0xff]  }
 0x2be   : > { %3633 = vmatmul.mubr.bf16.vlgmr.msra.gmra.mrb[96].mxu1 %v4631_v53  ;;  %v3917_v53 = vld [vmem:[#allocation10 + $0xa0] sm:$0xff]  }
 0x2bf   : > { %3636 = vmatprep.mubr.bf16.mxu1 %v4643_v37  ;;  %3521 = vmatpush3.bf16.msra.mxu1 %v3905_v35  ;;  %v3918_v37 = vld [vmem:[#allocation10 + $0xe8] sm:$0xff]  }
 0x2c0   : > { %3522 = vmatprep.subr.bf16.mxu1 %v3906_v10 }
 0x2c3   : > { %3523 = vmatpush3.bf16.msra.mxu1 %v3907_v41 }
 0x2c4   : > { %3524 = vmatprep.subr.bf16.mxu1 %v3910_v0 }
 0x2c6   : > { %3637 = vmatmul.mubr.bf16.gmra.mrb[100].mxu1 %v4655_v60  ;;  %v3920_v60 = vld [vmem:[#allocation10 + $0x78] sm:$0xff]  }
 0x2c7   : > { %3640 = vmatprep.mubr.bf16.mxu1 %v4667_v42  ;;  %3525 = vmatpush3.bf16.msra.mxu1 %v3911_v8  ;;  %v3924_v42 = vld [vmem:[#allocation10 + $0xf8] sm:$0xff]  }
 0x2c8   : > { %3526 = vmatprep.subr.bf16.mxu1 %v3912_v43  ;;  %3470 = vmatprep.subr.bf16.mxu0 %v3920_v60 }
 0x2c9   : > { %3471 = vmatpush3.bf16.msra.mxu0 %v3921_v46 }
 0x2cb   : > { %3527 = vmatpush3.bf16.msra.mxu1 %v3913_v52 }
 0x2cc   : > { %3528 = vmatprep.subr.bf16.mxu1 %v3916_v4 }
 0x2ce   : > { %3641 = vmatmul.mubr.bf16.gmra.mrb[104].mxu1 %v1656_v9 }
 0x2cf   : > { %3644 = vmatprep.mubr.bf16.mxu1 %v1657_v6  ;;  %3529 = vmatpush3.bf16.msra.mxu1 %v3917_v53 }
 0x2d0   : > { %3530 = vmatprep.subr.bf16.mxu1 %v3918_v37 }
 0x2d3   : > { %3531 = vmatpush3.bf16.msra.mxu1 %v3919_v12 }
 0x2d4   : > { %3532 = vmatprep.subr.bf16.mxu1 %v3922_v44 }
 0x2d6   : > { %3645 = vmatmul.mubr.bf16.gmra.mrb[108].mxu1 %v1658_v16 }
 0x2d7   : > { %3533 = vmatpush3.bf16.msra.mxu1 %v3923_v45 }
 0x2d8   : > { %3534 = vmatprep.subr.bf16.mxu1 %v3924_v42 }
 0x2db   : > { %3535 = vmatpush3.bf16.msra.mxu1 %v3925_v47 }
 0x351   : > { %v1976_v51 = vpop.f32.mrb[64].mxu1  ;;  %v2089_v24 = vpop.f32.mrb[80].mxu0 }
 0x352   : > { %v1977_v22 = vadd.f32 %v1976_v51, %v4704_v32  ;;  %v2090_v54 = vadd.f32 %v2089_v24, %v4709_v49  ;;  %v1978_v55 = vpop.f32.mrb[65].mxu1  ;;  %v2091_v56 = vpop.f32.mrb[81].mxu0 }
 0x353   : > { %v1979_v23 = vadd.f32 %v1978_v55, %v4714_v50  ;;  %v2092_v57 = vadd.f32 %v2091_v56, %v4719_v7  ;;  %v1980_v11 = vpop.f32.mrb[66].mxu1  ;;  %v2093_v25 = vpop.f32.mrb[82].mxu0 }
 0x354   : > { %v1981_v58 = vadd.f32 %v1980_v11, %v4704_v32  ;;  %v2094_v9 = vadd.f32 %v2093_v25, %v4709_v49  ;;  %v1982_v26 = vpop.f32.mrb[67].mxu1  ;;  %v2095_v15 = vpop.f32.mrb[83].mxu0  ;;  %v2265_v62 = vmax.f32 %v1977_v22, 0.0  ;;  %v2267_v63 = vmax.f32 %v2090_v54, 0.0 }
 0x355   : > { %v1983_v59 = vadd.f32 %v1982_v26, %v4714_v50  ;;  %v2096_v61 = vadd.f32 %v2095_v15, %v4719_v7  ;;  %v2266_v2 = vmax.f32 %v1979_v23, 0.0  ;;  %v2268_v13 = vmax.f32 %v2092_v57, 0.0 }
 0x356   : > { %v2269_v17 = vmax.f32 %v1981_v58, 0.0  ;;  %v2271_v1 = vmax.f32 %v2094_v9, 0.0 }
 0x357   : > { %v2270_v3 = vmax.f32 %v1983_v59, 0.0  ;;  %v2272_v27 = vmax.f32 %v2096_v61, 0.0 }
 0x358   : > { %v2329_v5 = vpack.c.bf16 %v2269_v17, %v2265_v62  ;;  %v2331_v29 = vpack.c.bf16 %v2271_v1, %v2267_v63 }
 0x359   : > { %v2330_v18 = vpack.c.bf16 %v2270_v3, %v2266_v2  ;;  %v2332_v28 = vpack.c.bf16 %v2272_v27, %v2268_v13  ;;  %v1986_v19 = vpop.f32.mrb[68].mxu1  ;;  %v2099_v20 = vpop.f32.mrb[84].mxu0 }
 0x35a   : > { %v1987_v31 = vadd.f32 %v1986_v19, %v4704_v32  ;;  %v2100_v30 = vadd.f32 %v2099_v20, %v4709_v49  ;;  %v1988_v33 = vpop.f32.mrb[69].mxu1  ;;  %v2101_v6 = vpop.f32.mrb[85].mxu0 }
 0x35b   : > { %v1989_v14 = vadd.f32 %v1988_v33, %v4714_v50  ;;  %v2102_v36 = vadd.f32 %v2101_v6, %v4719_v7  ;;  %v1990_v38 = vpop.f32.mrb[70].mxu1  ;;  %v2103_v39 = vpop.f32.mrb[86].mxu0  ;;  %2649 = vmatprep.mubr.bf16.mxu0 %v2330_v18  ;;  %2746 = vmatprep.mubr.bf16.mxu1 %v2332_v28 }
 0x35c   : > { %v1991_v40 = vadd.f32 %v1990_v38, %v4704_v32  ;;  %v2104_v16 = vadd.f32 %v2103_v39, %v4709_v49  ;;  %v1992_v35 = vpop.f32.mrb[71].mxu1  ;;  %v2105_v10 = vpop.f32.mrb[87].mxu0  ;;  %2650 = vmatmul.mubr.bf16.vlgmr.msra.gmra.mrb[112].mxu0 %v2329_v5  ;;  %2747 = vmatmul.mubr.bf16.vlgmr.msra.gmra.mrb[112].mxu1 %v2331_v29  ;;  %v2273_v8 = vmax.f32 %v1987_v31, 0.0  ;;  %v2275_v43 = vmax.f32 %v2100_v30, 0.0 }
 0x35d   : > { %v1993_v41 = vadd.f32 %v1992_v35, %v4714_v50  ;;  %v2106_v0 = vadd.f32 %v2105_v10, %v4719_v7  ;;  %v2274_v53 = vmax.f32 %v1989_v14, 0.0  ;;  %v2276_v37 = vmax.f32 %v2102_v36, 0.0 }
 0x35e   : > { %v2277_v52 = vmax.f32 %v1991_v40, 0.0  ;;  %v2279_v4 = vmax.f32 %v2104_v16, 0.0 }
 0x35f   : > { %v2278_v12 = vmax.f32 %v1993_v41, 0.0  ;;  %v2280_v44 = vmax.f32 %v2106_v0, 0.0 }
 0x360   : > { %v2333_v45 = vpack.c.bf16 %v2277_v52, %v2273_v8  ;;  %v2335_v60 = vpack.c.bf16 %v2279_v4, %v2275_v43 }
 0x361   : > { %v2334_v42 = vpack.c.bf16 %v2278_v12, %v2274_v53  ;;  %v2336_v46 = vpack.c.bf16 %v2280_v44, %v2276_v37  ;;  %v1996_v47 = vpop.f32.mrb[72].mxu1  ;;  %v2109_v51 = vpop.f32.mrb[88].mxu0 }
 0x362   : > { %v1997_v24 = vadd.f32 %v1996_v47, %v4704_v32  ;;  %v2110_v22 = vadd.f32 %v2109_v51, %v4709_v49  ;;  %v1998_v54 = vpop.f32.mrb[73].mxu1  ;;  %v2111_v55 = vpop.f32.mrb[89].mxu0 }
 0x363   : > { %v1999_v56 = vadd.f32 %v1998_v54, %v4714_v50  ;;  %v2112_v23 = vadd.f32 %v2111_v55, %v4719_v7  ;;  %v2000_v57 = vpop.f32.mrb[74].mxu1  ;;  %v2113_v11 = vpop.f32.mrb[90].mxu0  ;;  %2657 = vmatprep.mubr.bf16.mxu0 %v2334_v42  ;;  %2754 = vmatprep.mubr.bf16.mxu1 %v2336_v46 }
 0x364   : > { %v2001_v25 = vadd.f32 %v2000_v57, %v4704_v32  ;;  %v2114_v58 = vadd.f32 %v2113_v11, %v4709_v49  ;;  %v2002_v9 = vpop.f32.mrb[75].mxu1  ;;  %v2115_v26 = vpop.f32.mrb[91].mxu0  ;;  %2658 = vmatmul.mubr.bf16.gmra.mrb[116].mxu0 %v2333_v45  ;;  %2755 = vmatmul.mubr.bf16.gmra.mrb[116].mxu1 %v2335_v60  ;;  %v2281_v61 = vmax.f32 %v1997_v24, 0.0  ;;  %v2283_v62 = vmax.f32 %v2110_v22, 0.0 }
 0x365   : > { %v2003_v15 = vadd.f32 %v2002_v9, %v4714_v50  ;;  %v2116_v59 = vadd.f32 %v2115_v26, %v4719_v7  ;;  %v2282_v1 = vmax.f32 %v1999_v56, 0.0  ;;  %v2284_v2 = vmax.f32 %v2112_v23, 0.0 }
 0x366   : > { %v2285_v63 = vmax.f32 %v2001_v25, 0.0  ;;  %v2287_v17 = vmax.f32 %v2114_v58, 0.0 }
 0x367   : > { %v2286_v13 = vmax.f32 %v2003_v15, 0.0  ;;  %v2288_v3 = vmax.f32 %v2116_v59, 0.0 }
 0x368   : > { %v2337_v27 = vpack.c.bf16 %v2285_v63, %v2281_v61  ;;  %v2339_v5 = vpack.c.bf16 %v2287_v17, %v2283_v62 }
 0x369   : > { %v2338_v29 = vpack.c.bf16 %v2286_v13, %v2282_v1  ;;  %v2340_v18 = vpack.c.bf16 %v2288_v3, %v2284_v2  ;;  %v2006_v28 = vpop.f32.mrb[76].mxu1  ;;  %v2119_v19 = vpop.f32.mrb[92].mxu0 }
 0x36a   : > { %v2007_v20 = vadd.f32 %v2006_v28, %v4704_v32  ;;  %v2120_v31 = vadd.f32 %v2119_v19, %v4709_v49  ;;  %v2008_v30 = vpop.f32.mrb[77].mxu1  ;;  %v2121_v33 = vpop.f32.mrb[93].mxu0 }
 0x36b   : > { %v2009_v6 = vadd.f32 %v2008_v30, %v4714_v50  ;;  %v2122_v14 = vadd.f32 %v2121_v33, %v4719_v7  ;;  %v2010_v36 = vpop.f32.mrb[78].mxu1  ;;  %v2123_v38 = vpop.f32.mrb[94].mxu0  ;;  %2665 = vmatprep.mubr.bf16.mxu0 %v2338_v29  ;;  %2762 = vmatprep.mubr.bf16.mxu1 %v2340_v18 }
 0x36c   : > { %v2011_v39 = vadd.f32 %v2010_v36, %v4704_v32  ;;  %v2124_v40 = vadd.f32 %v2123_v38, %v4709_v49  ;;  %v2012_v16 = vpop.f32.mrb[79].mxu1  ;;  %v2125_v35 = vpop.f32.mrb[95].mxu0  ;;  %2666 = vmatmul.mubr.bf16.gmra.mrb[120].mxu0 %v2337_v27  ;;  %2763 = vmatmul.mubr.bf16.gmra.mrb[120].mxu1 %v2339_v5  ;;  %v2289_v0 = vmax.f32 %v2007_v20, 0.0  ;;  %v2291_v8 = vmax.f32 %v2120_v31, 0.0 }
 0x36d   : > { %v2013_v10 = vadd.f32 %v2012_v16, %v4714_v50  ;;  %v2126_v41 = vadd.f32 %v2125_v35, %v4719_v7  ;;  %v2290_v4 = vmax.f32 %v2009_v6, 0.0  ;;  %v2292_v53 = vmax.f32 %v2122_v14, 0.0 }
 0x36e   : > { %v2293_v43 = vmax.f32 %v2011_v39, 0.0  ;;  %v2295_v52 = vmax.f32 %v2124_v40, 0.0 }
 0x36f   : > { %v2294_v37 = vmax.f32 %v2013_v10, 0.0  ;;  %v2296_v12 = vmax.f32 %v2126_v41, 0.0 }
 0x370   : > { %v2341_v44 = vpack.c.bf16 %v2293_v43, %v2289_v0  ;;  %v2343_v45 = vpack.c.bf16 %v2295_v52, %v2291_v8 }
 0x371   : > { %v2342_v60 = vpack.c.bf16 %v2294_v37, %v2290_v4  ;;  %v2344_v42 = vpack.c.bf16 %v2296_v12, %v2292_v53  ;;  %v2016_v46 = vpop.f32.mrb[80].mxu1  ;;  %v2129_v47 = vpop.f32.mrb[96].mxu0 }
 0x372   : > { %v2017_v51 = vadd.f32 %v2016_v46, %v4704_v32  ;;  %v2130_v24 = vadd.f32 %v2129_v47, %v4709_v49  ;;  %v2018_v22 = vpop.f32.mrb[81].mxu1  ;;  %v2131_v54 = vpop.f32.mrb[97].mxu0 }
 0x373   : > { %v2019_v55 = vadd.f32 %v2018_v22, %v4714_v50  ;;  %v2132_v56 = vadd.f32 %v2131_v54, %v4719_v7  ;;  %v2020_v23 = vpop.f32.mrb[82].mxu1  ;;  %v2133_v57 = vpop.f32.mrb[98].mxu0  ;;  %2673 = vmatprep.mubr.bf16.mxu0 %v2342_v60  ;;  %2770 = vmatprep.mubr.bf16.mxu1 %v2344_v42 }
 0x374   : > { %v2021_v11 = vadd.f32 %v2020_v23, %v4704_v32  ;;  %v2134_v25 = vadd.f32 %v2133_v57, %v4709_v49  ;;  %v2022_v58 = vpop.f32.mrb[83].mxu1  ;;  %v2135_v9 = vpop.f32.mrb[99].mxu0  ;;  %2674 = vmatmul.mubr.bf16.gmra.mrb[124].mxu0 %v2341_v44  ;;  %2771 = vmatmul.mubr.bf16.gmra.mrb[124].mxu1 %v2343_v45  ;;  %v2297_v59 = vmax.f32 %v2017_v51, 0.0  ;;  %v2299_v61 = vmax.f32 %v2130_v24, 0.0 }
 0x375   : > { %v2023_v26 = vadd.f32 %v2022_v58, %v4714_v50  ;;  %v2136_v15 = vadd.f32 %v2135_v9, %v4719_v7  ;;  %v2298_v17 = vmax.f32 %v2019_v55, 0.0  ;;  %v2300_v1 = vmax.f32 %v2132_v56, 0.0 }
 0x376   : > { %v2301_v62 = vmax.f32 %v2021_v11, 0.0  ;;  %v2303_v63 = vmax.f32 %v2134_v25, 0.0 }
 0x377   : > { %v2302_v2 = vmax.f32 %v2023_v26, 0.0  ;;  %v2304_v13 = vmax.f32 %v2136_v15, 0.0 }
 0x378   : > { %v2345_v3 = vpack.c.bf16 %v2301_v62, %v2297_v59  ;;  %v2347_v27 = vpack.c.bf16 %v2303_v63, %v2299_v61 }
 0x379   : > { %v2346_v5 = vpack.c.bf16 %v2302_v2, %v2298_v17  ;;  %v2348_v29 = vpack.c.bf16 %v2304_v13, %v2300_v1  ;;  %v2026_v18 = vpop.f32.mrb[84].mxu1  ;;  %v2139_v28 = vpop.f32.mrb[100].mxu0 }
 0x37a   : > { %v2027_v19 = vadd.f32 %v2026_v18, %v4704_v32  ;;  %v2140_v20 = vadd.f32 %v2139_v28, %v4709_v49  ;;  %v2028_v31 = vpop.f32.mrb[85].mxu1  ;;  %v2141_v30 = vpop.f32.mrb[101].mxu0 }
 0x37b   : > { %v2029_v33 = vadd.f32 %v2028_v31, %v4714_v50  ;;  %v2142_v6 = vadd.f32 %v2141_v30, %v4719_v7  ;;  %v2030_v14 = vpop.f32.mrb[86].mxu1  ;;  %v2143_v36 = vpop.f32.mrb[102].mxu0  ;;  %2681 = vmatprep.mubr.bf16.mxu0 %v2346_v5  ;;  %2778 = vmatprep.mubr.bf16.mxu1 %v2348_v29 }
 0x37c   : > { %v2031_v38 = vadd.f32 %v2030_v14, %v4704_v32  ;;  %v2144_v39 = vadd.f32 %v2143_v36, %v4709_v49  ;;  %v2032_v40 = vpop.f32.mrb[87].mxu1  ;;  %v2145_v16 = vpop.f32.mrb[103].mxu0  ;;  %2682 = vmatmul.mubr.bf16.gmra.mrb[128].mxu0 %v2345_v3  ;;  %2779 = vmatmul.mubr.bf16.gmra.mrb[128].mxu1 %v2347_v27  ;;  %v2305_v41 = vmax.f32 %v2027_v19, 0.0  ;;  %v2307_v0 = vmax.f32 %v2140_v20, 0.0 }
 0x37d   : > { %v2033_v35 = vadd.f32 %v2032_v40, %v4714_v50  ;;  %v2146_v10 = vadd.f32 %v2145_v16, %v4719_v7  ;;  %v2306_v52 = vmax.f32 %v2029_v33, 0.0  ;;  %v2308_v4 = vmax.f32 %v2142_v6, 0.0 }
 0x37e   : > { %v2309_v8 = vmax.f32 %v2031_v38, 0.0  ;;  %v2311_v43 = vmax.f32 %v2144_v39, 0.0 }
 0x37f   : > { %v2310_v53 = vmax.f32 %v2033_v35, 0.0  ;;  %v2312_v37 = vmax.f32 %v2146_v10, 0.0 }
 0x380   : > { %v2349_v12 = vpack.c.bf16 %v2309_v8, %v2305_v41  ;;  %v2351_v44 = vpack.c.bf16 %v2311_v43, %v2307_v0 }
 0x381   : > { %v2350_v45 = vpack.c.bf16 %v2310_v53, %v2306_v52  ;;  %v2352_v60 = vpack.c.bf16 %v2312_v37, %v2308_v4  ;;  %v2036_v42 = vpop.f32.mrb[88].mxu1  ;;  %v2149_v46 = vpop.f32.mrb[104].mxu0 }
 0x382   : > { %v2037_v47 = vadd.f32 %v2036_v42, %v4704_v32  ;;  %v2150_v51 = vadd.f32 %v2149_v46, %v4709_v49  ;;  %v2038_v24 = vpop.f32.mrb[89].mxu1  ;;  %v2151_v22 = vpop.f32.mrb[105].mxu0 }
 0x383   : > { %v2039_v54 = vadd.f32 %v2038_v24, %v4714_v50  ;;  %v2152_v55 = vadd.f32 %v2151_v22, %v4719_v7  ;;  %v2040_v56 = vpop.f32.mrb[90].mxu1  ;;  %v2153_v23 = vpop.f32.mrb[106].mxu0  ;;  %2689 = vmatprep.mubr.bf16.mxu0 %v2350_v45  ;;  %2786 = vmatprep.mubr.bf16.mxu1 %v2352_v60 }
 0x384   : > { %v2041_v57 = vadd.f32 %v2040_v56, %v4704_v32  ;;  %v2154_v11 = vadd.f32 %v2153_v23, %v4709_v49  ;;  %v2042_v25 = vpop.f32.mrb[91].mxu1  ;;  %v2155_v58 = vpop.f32.mrb[107].mxu0  ;;  %2690 = vmatmul.mubr.bf16.gmra.mrb[132].mxu0 %v2349_v12  ;;  %2787 = vmatmul.mubr.bf16.gmra.mrb[132].mxu1 %v2351_v44  ;;  %v2313_v15 = vmax.f32 %v2037_v47, 0.0  ;;  %v2315_v59 = vmax.f32 %v2150_v51, 0.0 }
 0x385   : > { %v2043_v9 = vadd.f32 %v2042_v25, %v4714_v50  ;;  %v2156_v26 = vadd.f32 %v2155_v58, %v4719_v7  ;;  %v2314_v63 = vmax.f32 %v2039_v54, 0.0  ;;  %v2316_v17 = vmax.f32 %v2152_v55, 0.0 }
 0x386   : > { %v2317_v61 = vmax.f32 %v2041_v57, 0.0  ;;  %v2319_v62 = vmax.f32 %v2154_v11, 0.0  ;;  %v4810_v11 = vrot.slane %v4699_v48, %v496_v34  ;;  %v4817_v48 = vld [vmem:[%s4931_s8] ss:$0 sm:$0xff] }
 0x387   : > { %v2318_v1 = vmax.f32 %v2043_v9, 0.0  ;;  %v2320_v2 = vmax.f32 %v2156_v26, 0.0 }
 0x388   : > { %v2353_v13 = vpack.c.bf16 %v2317_v61, %v2313_v15  ;;  %v2355_v3 = vpack.c.bf16 %v2319_v62, %v2315_v59 }
 0x389   : > { %v2354_v27 = vpack.c.bf16 %v2318_v1, %v2314_v63  ;;  %v2356_v5 = vpack.c.bf16 %v2320_v2, %v2316_v17  ;;  %v2046_v29 = vpop.f32.mrb[92].mxu1  ;;  %v2159_v18 = vpop.f32.mrb[108].mxu0 }
 0x38a   : > { %v2047_v28 = vadd.f32 %v2046_v29, %v4704_v32  ;;  %v2160_v19 = vadd.f32 %v2159_v18, %v4709_v49  ;;  %v2048_v20 = vpop.f32.mrb[93].mxu1  ;;  %v2161_v31 = vpop.f32.mrb[109].mxu0 }
 0x38b   : > { %v2049_v30 = vadd.f32 %v2048_v20, %v4714_v50  ;;  %v2162_v33 = vadd.f32 %v2161_v31, %v4719_v7  ;;  %v2050_v6 = vpop.f32.mrb[94].mxu1  ;;  %v2163_v14 = vpop.f32.mrb[110].mxu0  ;;  %2697 = vmatprep.mubr.bf16.mxu0 %v2354_v27  ;;  %2794 = vmatprep.mubr.bf16.mxu1 %v2356_v5 }
 0x38c   : > { %v2051_v36 = vadd.f32 %v2050_v6, %v4704_v32  ;;  %v2164_v38 = vadd.f32 %v2163_v14, %v4709_v49  ;;  %v2052_v39 = vpop.f32.mrb[95].mxu1  ;;  %v2165_v40 = vpop.f32.mrb[111].mxu0  ;;  %2698 = vmatmul.mubr.bf16.gmra.mrb[136].mxu0 %v2353_v13  ;;  %2795 = vmatmul.mubr.bf16.gmra.mrb[136].mxu1 %v2355_v3  ;;  %v2321_v10 = vmax.f32 %v2047_v28, 0.0  ;;  %v2323_v41 = vmax.f32 %v2160_v19, 0.0 }
 0x38d   : > { %v2053_v16 = vadd.f32 %v2052_v39, %v4714_v50  ;;  %v2166_v35 = vadd.f32 %v2165_v40, %v4719_v7  ;;  %v2322_v43 = vmax.f32 %v2049_v30, 0.0  ;;  %v2324_v52 = vmax.f32 %v2162_v33, 0.0 }
 0x38e   : > { %v2325_v0 = vmax.f32 %v2051_v36, 0.0  ;;  %v2327_v8 = vmax.f32 %v2164_v38, 0.0 }
 0x38f   : > { %v2326_v4 = vmax.f32 %v2053_v16, 0.0  ;;  %v2328_v53 = vmax.f32 %v2166_v35, 0.0 }
 0x390   : > { %v2357_v37 = vpack.c.bf16 %v2325_v0, %v2321_v10  ;;  %v2359_v32 = vpack.c.bf16 %v2327_v8, %v2323_v41 }
 0x391   : > { %v2358_v12 = vpack.c.bf16 %v2326_v4, %v2322_v43  ;;  %v2360_v49 = vpack.c.bf16 %v2328_v53, %v2324_v52  ;;  %v3634_v44 = vpop.f32.mrb[96].mxu1 }
 0x392   : > { %v2202_v45 = vpop.f32.mrb[97].mxu1  ;;  %v2211_v28 = vadd.f32 %v3634_v44, %v4810_v11 }
 0x393   : > { %v3635_v60 = vpop.f32.mrb[98].mxu1  ;;  %2705 = vmatprep.mubr.bf16.mxu0 %v2358_v12  ;;  %2802 = vmatprep.mubr.bf16.mxu1 %v2360_v49  ;;  %v2203_v15 = vadd.f32 %v2202_v45, %v4810_v11 }
 0x394   : > { %v2205_v50 = vpop.f32.mrb[99].mxu1  ;;  %2706 = vmatmul.mubr.bf16.gmra.mrb[140].mxu0 %v2357_v37  ;;  %2803 = vmatmul.mubr.bf16.gmra.mrb[140].mxu1 %v2359_v32  ;;  %v2214_v38 = vadd.f32 %v3635_v60, %v4810_v11 }
 0x395   : > { %v2206_v2 = vadd.f32 %v2205_v50, %v4810_v11 }
 0x399   : > { %v4785_v7 = vpop.f32.mrb[100].mxu1 }
 0x39a   : > { %v2218_v42 = vpop.f32.mrb[101].mxu1 }
 0x39b   : > { %v4787_v46 = vpop.f32.mrb[102].mxu1  ;;  %v2219_v53 = vadd.f32 %v2218_v42, %v4810_v11 }
 0x39c   : > { %v4789_v47 = vpop.f32.mrb[103].mxu1 }
 0x3a1   : > { %v4791_v51 = vpop.f32.mrb[104].mxu1 }
 0x3a2   : > { %v4793_v24 = vpop.f32.mrb[105].mxu1 }
 0x3a3   : > { %v4795_v22 = vpop.f32.mrb[106].mxu1 }
 0x3a4   : > { %v4797_v54 = vpop.f32.mrb[107].mxu1 }
 0x3a9   : > { %v4799_v55 = vpop.f32.mrb[108].mxu1 }
 0x3aa   : > { %v4801_v56 = vpop.f32.mrb[109].mxu1 }
 0x3ab   : > { %v4803_v23 = vpop.f32.mrb[110].mxu1 }
 0x3ac   : > { %v4805_v57 = vpop.f32.mrb[111].mxu1 }
 0x42f   : > { %v3472_v25 = vpop.f32.mrb[112].mxu0  ;;  %v3536_v58 = vpop.f32.mrb[112].mxu1 }
 0x430   : > { %v3473_v9 = vpop.f32.mrb[113].mxu0  ;;  %v3537_v26 = vpop.f32.mrb[113].mxu1 }
 0x431   : > { %v3474_v59 = vadd.f32 %v3473_v9, %v3472_v25  ;;  %v3538_v61 = vadd.f32 %v3537_v26, %v3536_v58  ;;  %v3475_v62 = vpop.f32.mrb[114].mxu0  ;;  %v3539_v63 = vpop.f32.mrb[114].mxu1  ;;  %v2222_v25 = vadd.f32 %v4789_v47, %v4810_v11 }
 0x432   : > { %v3476_v17 = vpop.f32.mrb[115].mxu0  ;;  %v3540_v1 = vpop.f32.mrb[115].mxu1 }
 0x433   : > { %v2652_v13 = vadd.f32 %v3474_v59, %v2203_v15  ;;  %v3477_v3 = vadd.f32 %v3476_v17, %v3475_v62  ;;  %v3541_v21 = vadd.f32 %v3540_v1, %v3539_v63 }
 0x435   : > { %v2749_v27 = vadd.f32 %v3538_v61, %v2652_v13  ;;  %v2655_v34 = vadd.f32 %v3477_v3, %v2206_v2  ;;  %v2227_v2 = vadd.f32 %v4785_v7, %v4810_v11 }
 0x437   : > { %v2752_v5 = vadd.f32 %v3541_v21, %v2655_v34  ;;  %v3478_v29 = vpop.f32.mrb[116].mxu0  ;;  %v3542_v18 = vpop.f32.mrb[116].mxu1  ;;  %v2818_v31 = vadd.f32 %v4817_v48, %v2749_v27 }
 0x438   : > { %v3479_v19 = vpop.f32.mrb[117].mxu0  ;;  %v3543_v20 = vpop.f32.mrb[117].mxu1 }
 0x439   : > { %v2819_v30 = vadd.f32 %v4817_v48, %v2752_v5  ;;  %v3480_v33 = vadd.f32 %v3479_v19, %v3478_v29  ;;  %v3544_v6 = vadd.f32 %v3543_v20, %v3542_v18  ;;  %v3481_v14 = vpop.f32.mrb[118].mxu0  ;;  %v3545_v36 = vpop.f32.mrb[118].mxu1  ;;  %v2230_v18 = vadd.f32 %v4787_v46, %v4810_v11 }
 0x43a   : > { %v3482_v39 = vpop.f32.mrb[119].mxu0  ;;  %v3546_v40 = vpop.f32.mrb[119].mxu1 }
 0x43b   : > { %v3252_v16 = vpack.c.bf16 %v2819_v30, %v2818_v31  ;;  %v2660_v35 = vadd.f32 %v3480_v33, %v2211_v28  ;;  %v3483_v10 = vadd.f32 %v3482_v39, %v3481_v14  ;;  %v3547_v41 = vadd.f32 %v3546_v40, %v3545_v36 }
 0x43c   : > { %v2235_v39 = vadd.f32 %v4793_v24, %v4810_v11 }
 0x43d   : > { %3253 = vst [vmem:[%s4825_s18] sm:$0xff] %v3252_v16   ;;  %v2757_v0 = vadd.f32 %v3544_v6, %v2660_v35  ;;  %v2663_v8 = vadd.f32 %v3483_v10, %v2214_v38 }
 0x43f   : > { %v2760_v43 = vadd.f32 %v3547_v41, %v2663_v8  ;;  %v3484_v52 = vpop.f32.mrb[120].mxu0  ;;  %v3548_v4 = vpop.f32.mrb[120].mxu1  ;;  %v2820_v12 = vadd.f32 %v4817_v48, %v2757_v0 }
 0x440   : > { %v3485_v37 = vpop.f32.mrb[121].mxu0  ;;  %v3549_v32 = vpop.f32.mrb[121].mxu1 }
 0x441   : > { %v2821_v49 = vadd.f32 %v4817_v48, %v2760_v43  ;;  %v3486_v44 = vadd.f32 %v3485_v37, %v3484_v52  ;;  %v3550_v45 = vadd.f32 %v3549_v32, %v3548_v4  ;;  %v3487_v60 = vpop.f32.mrb[122].mxu0  ;;  %v3551_v50 = vpop.f32.mrb[122].mxu1  ;;  %v2238_v43 = vadd.f32 %v4797_v54, %v4810_v11 }
 0x442   : > { %v3488_v58 = vpop.f32.mrb[123].mxu0  ;;  %v3552_v9 = vpop.f32.mrb[123].mxu1 }
 0x443   : > { %v3257_v26 = vpack.c.bf16 %v2821_v49, %v2820_v12  ;;  %v2668_v15 = vadd.f32 %v3486_v44, %v2219_v53  ;;  %v3489_v59 = vadd.f32 %v3488_v58, %v3487_v60  ;;  %v3553_v42 = vadd.f32 %v3552_v9, %v3551_v50 }
 0x444   : > { %v2243_v50 = vadd.f32 %v4791_v51, %v4810_v11 }
 0x445   : > { %3289 = vst [vmem:[%s4825_s18 + $0x8] sm:$0xff] %v3257_v26   ;;  %v2765_v61 = vadd.f32 %v3550_v45, %v2668_v15  ;;  %v2671_v62 = vadd.f32 %v3489_v59, %v2222_v25 }
 0x447   : > { %v2768_v63 = vadd.f32 %v3553_v42, %v2671_v62  ;;  %v3490_v17 = vpop.f32.mrb[124].mxu0  ;;  %v3554_v1 = vpop.f32.mrb[124].mxu1  ;;  %v2822_v47 = vadd.f32 %v4817_v48, %v2765_v61  ;;  %v2246_v61 = vadd.f32 %v4795_v22, %v4810_v11 }
 0x448   : > { %v3491_v13 = vpop.f32.mrb[125].mxu0  ;;  %v3555_v3 = vpop.f32.mrb[125].mxu1 }
 0x449   : > { %v2823_v21 = vadd.f32 %v4817_v48, %v2768_v63  ;;  %v3492_v27 = vadd.f32 %v3491_v13, %v3490_v17  ;;  %v3556_v34 = vadd.f32 %v3555_v3, %v3554_v1  ;;  %v3493_v5 = vpop.f32.mrb[126].mxu0  ;;  %v3557_v29 = vpop.f32.mrb[126].mxu1 }
 0x44a   : > { %v3494_v28 = vpop.f32.mrb[127].mxu0  ;;  %v3558_v19 = vpop.f32.mrb[127].mxu1 }
 0x44b   : > { %v3262_v20 = vpack.c.bf16 %v2823_v21, %v2822_v47  ;;  %v2676_v31 = vadd.f32 %v3492_v27, %v2227_v2  ;;  %v3495_v30 = vadd.f32 %v3494_v28, %v3493_v5  ;;  %v3559_v7 = vadd.f32 %v3558_v19, %v3557_v29 }
 0x44d   : > { %3290 = vst [vmem:[%s4825_s18 + $0x10] sm:$0xff] %v3262_v20   ;;  %v2773_v33 = vadd.f32 %v3556_v34, %v2676_v31  ;;  %v2679_v6 = vadd.f32 %v3495_v30, %v2230_v18  ;;  %v2251_v34 = vadd.f32 %v4801_v56, %v4810_v11  ;;  %v2254_v30 = vadd.f32 %v4805_v57, %v4810_v11 }
 0x44f   : > { %v2776_v14 = vadd.f32 %v3559_v7, %v2679_v6  ;;  %v3496_v36 = vpop.f32.mrb[128].mxu0  ;;  %v3560_v38 = vpop.f32.mrb[128].mxu1  ;;  %v2824_v46 = vadd.f32 %v4817_v48, %v2773_v33 }
 0x450   : > { %v3497_v40 = vpop.f32.mrb[129].mxu0  ;;  %v3561_v16 = vpop.f32.mrb[129].mxu1 }
 0x451   : > { %v2825_v35 = vadd.f32 %v4817_v48, %v2776_v14  ;;  %v3498_v10 = vadd.f32 %v3497_v40, %v3496_v36  ;;  %v3562_v41 = vadd.f32 %v3561_v16, %v3560_v38  ;;  %v3499_v0 = vpop.f32.mrb[130].mxu0  ;;  %v3563_v8 = vpop.f32.mrb[130].mxu1 }
 0x452   : > { %v3500_v52 = vpop.f32.mrb[131].mxu0  ;;  %v3564_v4 = vpop.f32.mrb[131].mxu1 }
 0x453   : > { %v3267_v53 = vpack.c.bf16 %v2825_v35, %v2824_v46  ;;  %v2684_v37 = vadd.f32 %v3498_v10, %v2235_v39  ;;  %v3501_v32 = vadd.f32 %v3500_v52, %v3499_v0  ;;  %v3565_v24 = vadd.f32 %v3564_v4, %v3563_v8 }
 0x454   : > { %v2259_v35 = vadd.f32 %v4799_v55, %v4810_v11 }
 0x455   : > { %3291 = vst [vmem:[%s4825_s18 + $0x18] sm:$0xff] %v3267_v53   ;;  %v2781_v12 = vadd.f32 %v3562_v41, %v2684_v37  ;;  %v2687_v49 = vadd.f32 %v3501_v32, %v2238_v43  ;;  %v2262_v53 = vadd.f32 %v4803_v23, %v4810_v11 }
 0x457   : > { %v2784_v44 = vadd.f32 %v3565_v24, %v2687_v49  ;;  %v3502_v45 = vpop.f32.mrb[132].mxu0  ;;  %v3566_v60 = vpop.f32.mrb[132].mxu1  ;;  %v2826_v54 = vadd.f32 %v4817_v48, %v2781_v12 }
 0x458   : > { %v3503_v25 = vpop.f32.mrb[133].mxu0  ;;  %v3567_v58 = vpop.f32.mrb[133].mxu1 }
 0x459   : > { %v2827_v9 = vadd.f32 %v4817_v48, %v2784_v44  ;;  %v3504_v26 = vadd.f32 %v3503_v25, %v3502_v45  ;;  %v3568_v15 = vadd.f32 %v3567_v58, %v3566_v60  ;;  %v3505_v59 = vpop.f32.mrb[134].mxu0  ;;  %v3569_v42 = vpop.f32.mrb[134].mxu1 }
 0x45a   : > { %v3506_v62 = vpop.f32.mrb[135].mxu0  ;;  %v3570_v63 = vpop.f32.mrb[135].mxu1 }
 0x45b   : > { %v3272_v17 = vpack.c.bf16 %v2827_v9, %v2826_v54  ;;  %v2692_v1 = vadd.f32 %v3504_v26, %v2243_v50  ;;  %v3507_v2 = vadd.f32 %v3506_v62, %v3505_v59  ;;  %v3571_v51 = vadd.f32 %v3570_v63, %v3569_v42 }
 0x45d   : > { %3292 = vst [vmem:[%s4825_s18 + $0x20] sm:$0xff] %v3272_v17   ;;  %v2789_v13 = vadd.f32 %v3568_v15, %v2692_v1  ;;  %v2695_v3 = vadd.f32 %v3507_v2, %v2246_v61 }
 0x45f   : > { %v2792_v47 = vadd.f32 %v3571_v51, %v2695_v3  ;;  %v3508_v21 = vpop.f32.mrb[136].mxu0  ;;  %v3572_v27 = vpop.f32.mrb[136].mxu1  ;;  %v2828_v22 = vadd.f32 %v4817_v48, %v2789_v13 }
 0x460   : > { %v3509_v5 = vpop.f32.mrb[137].mxu0  ;;  %v3573_v29 = vpop.f32.mrb[137].mxu1 }
 0x461   : > { %v2829_v18 = vadd.f32 %v4817_v48, %v2792_v47  ;;  %v3510_v28 = vadd.f32 %v3509_v5, %v3508_v21  ;;  %v3574_v19 = vadd.f32 %v3573_v29, %v3572_v27  ;;  %v3511_v20 = vpop.f32.mrb[138].mxu0  ;;  %v3575_v31 = vpop.f32.mrb[138].mxu1 }
 0x462   : > { %v3512_v7 = vpop.f32.mrb[139].mxu0  ;;  %v3576_v33 = vpop.f32.mrb[139].mxu1 }
 0x463   : > { %v3277_v6 = vpack.c.bf16 %v2829_v18, %v2828_v22  ;;  %v2700_v14 = vadd.f32 %v3510_v28, %v2251_v34  ;;  %v3513_v36 = vadd.f32 %v3512_v7, %v3511_v20  ;;  %v3577_v56 = vadd.f32 %v3576_v33, %v3575_v31 }
 0x465   : > { %3293 = vst [vmem:[%s4825_s18 + $0x28] sm:$0xff] %v3277_v6   ;;  %v2797_v38 = vadd.f32 %v3574_v19, %v2700_v14  ;;  %v2703_v39 = vadd.f32 %v3513_v36, %v2254_v30 }
 0x467   : > { %v2800_v40 = vadd.f32 %v3577_v56, %v2703_v39  ;;  %v3514_v16 = vpop.f32.mrb[140].mxu0  ;;  %v3578_v46 = vpop.f32.mrb[140].mxu1  ;;  %v2830_v57 = vadd.f32 %v4817_v48, %v2797_v38 }
 0x468   : > { %v3515_v10 = vpop.f32.mrb[141].mxu0  ;;  %v3579_v41 = vpop.f32.mrb[141].mxu1 }
 0x469   : > { %v2831_v0 = vadd.f32 %v4817_v48, %v2800_v40  ;;  %v3516_v8 = vadd.f32 %v3515_v10, %v3514_v16  ;;  %v3580_v43 = vadd.f32 %v3579_v41, %v3578_v46  ;;  %v3517_v52 = vpop.f32.mrb[142].mxu0  ;;  %v3581_v4 = vpop.f32.mrb[142].mxu1 }
 0x46a   : > { %v3518_v37 = vpop.f32.mrb[143].mxu0  ;;  %v3582_v32 = vpop.f32.mrb[143].mxu1 }
 0x46b   : > { %v3282_v55 = vpack.c.bf16 %v2831_v0, %v2830_v57  ;;  %v2708_v24 = vadd.f32 %v3516_v8, %v2259_v35  ;;  %v3519_v12 = vadd.f32 %v3518_v37, %v3517_v52  ;;  %v3583_v49 = vadd.f32 %v3582_v32, %v3581_v4 }
 0x46d   : > { %3294 = vst [vmem:[%s4825_s18 + $0x30] sm:$0xff] %v3282_v55   ;;  %v2805_v44 = vadd.f32 %v3580_v43, %v2708_v24  ;;  %v2711_v45 = vadd.f32 %v3519_v12, %v2262_v53 }
 0x46f   : > { %v2808_v60 = vadd.f32 %v3583_v49, %v2711_v45  ;;  %v2832_v50 = vadd.f32 %v4817_v48, %v2805_v44 }
 0x471   : > { %v2833_v25 = vadd.f32 %v4817_v48, %v2808_v60 }
 0x473   : > { %v3287_v23 = vpack.c.bf16 %v2833_v25, %v2832_v50 }
 0x475   : > { %3295 = vst [vmem:[%s4825_s18 + $0x38] sm:$0xff] %v3287_v23  }
 0x476   : > { %4081 = shalt.err (!%p4078_p13)
}
 0x477   : > { %s4082_s26 = scalar_lea.hbm %s4876_s15, 1024  ;;  %s4086_s18 = scalar_lea.hbm %s4956_s9, 2048 }
 0x478   : > { %p4083_p9 = scmp.ne.s32.totalorder %s4876_s15, %s4082_s26  ;;  %p4087_p4 = scmp.lt.u32.totalorder %s4876_s15, %s4956_s9 }
 0x479   : > { %p4088_p8 = scmp.lt.u32.totalorder %s4086_s18, %s4082_s26  ;;  %p4090_p3 = scmp.lt.u32.totalorder %s4082_s26, %s4876_s15 }
 0x47a   : > { %p4084_p0 = pnand %p4083_p9, %p4372_p10 }
 0x47b   : > { %p4089_p6 = por %p4088_p8, %p4087_p4 }
 0x47c   : > { %p4085_p11 = pneg %p4084_p0 }
 0x47d   : > { %p4091_p5 = por %p4090_p3, %p4089_p6 }
 0x47f   : > { %p4092_p7 = pnand %p4091_p5, %p4085_p11 }
 0x481   : > { %4095 = shalt.err (!%p4092_p7)
}
 0x482   : > { %s4155_s24 = smov 64   ;;  %s4156_s22 = smov 4  }
 0x483   : > { %3666 = dma.vmem_to_hbm [thread:$0]  (%p4372_p10), %s4878_s23, 1024, %s4876_s15, %s2915_s17, %s4155_s24, %s4155_s24, %s4156_s22  }
 0x484 PF: > { %s4957_s13 = sld [smem:[#allocation16_spill]]  ;;  %s4958_s25 = sld [smem:[#allocation17_spill]] }
 0x485   : > { %p4960_p2 = scmp.ge.s32.totalorder %s4142_s12, 2 }
 0x48a   : > { %s2943_s19 = sand.u32 1, %s4957_s13   ;;  %p4959_p12 = scmp.ne.s32.totalorder %s4958_s25, 0 }
 0x48b   : > { %s2944_s26 = scalar_lea.sflag [#allocation4], %s2943_s19 }
 0x48c   : > { %p3686_p1 = pnand %p4960_p2, %p4959_p12 }
 0x48e   : > { %4125 = dma.done.wait (!%p3686_p1), %s2944_s26, 1024  }
 0x48f   : > { %4127 = vsyncadd (!%p3686_p1), %s2944_s26, 4294966272  ;;  %p24_p13 = scmp.ge.s32.totalorder %s4362_s14, 4   ;;  %s4961_s30 = smov %s4134_s10 }
 0x490   : > { %s4962_s10 = smov %s4138_s11  ;;  %s4963_s11 = smov %s4378_s28 }
 0x491   : > { %s4964_s12 = smov %s4362_s14  ;;  %26 = sbr.rel (!%p24_p13) target bundleno = 9 (0x9), region = 117 }
 0x498   :  { %2949 = vsyncpa [#allocation3], 1 }
 0x499   :  { %2951 = vsyncpa [#allocation3 + $0x1], 1 }
 0x49a   :  { %2952 = vsyncpa [#allocation6], 1 }
 0x49b   :  { %2953 = vsyncpa [#allocation9], 1 }
 0x49c   :  { %2954 = vsyncpa [#allocation4], 1 }
 0x49d   :  { %2956 = vsyncpa [#allocation4 + $0x1], 1 }

</bundles_post_ra>
